<compile_context>
chip_gen: v7x
topology: tpu7x:2x2x1
jax: 0.10.0
libtpu: 0.0.40
codegen_flags: <defaults>
</compile_context>

<pallas_src>
import functools

import jax
import jax.numpy as jnp
from jax.experimental import pallas as pl
from jax.experimental.pallas import tpu as pltpu

LN_EPS = 1e-5


def _round_up(a, b):
    return (a + b - 1) // b * b


def _mixer_kernel(x_ref, w1_ref, b1_ref, w2_ref, b2_ref, o_ref, *, inv_d):
    xf = x_ref[...].astype(jnp.float32)                      # [TR, Dp]

    # --- LayerNorm stats, single pass over the TRUE feature dim ---
    # Padded feature columns are zero so sum / sum-of-squares are exact;
    # dividing by 1/in_dim (not 1/D_pad) gives the unpadded mean/variance.
    s1 = jnp.sum(xf, axis=-1, keepdims=True)                 # [TR, 1]
    s2 = jnp.sum(xf * xf, axis=-1, keepdims=True)            # [TR, 1]
    mean = s1 * inv_d
    var = jnp.maximum(s2 * inv_d - mean * mean, 0.0)
    xn = (xf - mean) * jax.lax.rsqrt(var + LN_EPS)           # [TR, Dp]
    # gamma/beta are folded into w1/b1 in prepare_params: no affine pass here.

    # --- Linear1 + ReLU : MXU matmul, f32 accumulate ---
    h = jnp.dot(xn.astype(w1_ref.dtype), w1_ref[...],
                preferred_element_type=jnp.float32) + b1_ref[...]
    h = jnp.maximum(h, 0.0)                                  # [TR, Hp]

    # --- Linear2 : MXU matmul, f32 accumulate ---
    y = jnp.dot(h.astype(w2_ref.dtype), w2_ref[...],
                preferred_element_type=jnp.float32) + b2_ref[...]

    # --- residual: re-read the VMEM-resident input tile (keeps x's f32 copy
    # out of the live set across both matmuls) ---
    o_ref[...] = (x_ref[...].astype(jnp.float32) + y).astype(o_ref.dtype)


def prepare_params(params, matmul_dtype=jnp.bfloat16):
    """One-time prep (hoisted out of the per-call path):
       * fold LayerNorm affine into Linear1 (in f32, before any bf16 cast):
           (xn*gamma + beta) @ W1^T + b1 == xn @ (gamma[:,None]*W1^T) + (b1 + beta@W1^T)
         (exact: the residual uses raw x, not xn)
       * transpose to [D,H] / [H,D], pad D and H to multiples of 128 (lane-dense),
       * cast weights to `matmul_dtype` (bf16 for the MXU)."""
    gamma = params["gamma"].astype(jnp.float32)              # [D]
    beta = params["beta"].astype(jnp.float32)                # [D]
    w1 = params["w1"].astype(jnp.float32)                    # [H, D] (torch layout)
    b1 = params["b1"].astype(jnp.float32)                    # [H]
    w2 = params["w2"].astype(jnp.float32)                    # [D, H]
    b2 = params["b2"].astype(jnp.float32)                    # [D]
    D = gamma.shape[0]
    H = b1.shape[0]

    w1t = w1.T * gamma[:, None]                              # [D, H]  (f32 fold)
    b1f = b1 + beta @ w1.T                                   # [H]
    w2t = w2.T                                               # [H, D]

    D_pad = _round_up(D, 128)
    H_pad = _round_up(H, 128)
    w1t = jnp.pad(w1t, ((0, D_pad - D), (0, H_pad - H)))
    b1f = jnp.pad(b1f, (0, H_pad - H))
    w2t = jnp.pad(w2t, ((0, H_pad - H), (0, D_pad - D)))
    b2p = jnp.pad(b2, (0, D_pad - D))

    return {
        "w1t": w1t.astype(matmul_dtype),                     # [D_pad, H_pad]
        "b1": b1f.reshape(1, H_pad),                         # f32
        "w2t": w2t.astype(matmul_dtype),                     # [H_pad, D_pad]
        "b2": b2p.reshape(1, D_pad),                         # f32
        "in_dim": D,
        "hidden": H,
    }


def feature_mixer_layer(x, prep, *, row_tile=None, vmem_limit_bytes=None):
    """x: [..., in_dim] (f32 or bf16); prep: output of prepare_params."""
    orig_shape = x.shape
    D = prep["in_dim"]
    assert orig_shape[-1] == D, f"last dim {orig_shape[-1]} != in_dim {D}"
    D_pad, H_pad = prep["w1t"].shape

    x2 = x.reshape(-1, D)                                    # [R, D]
    R = x2.shape[0]
    itemsize = jnp.dtype(x2.dtype).itemsize

    # Sublane tile for the I/O dtype: 8 (f32), 16 (bf16), 32 (int8/fp8).
    sub = {4: 8, 2: 16, 1: 32}.get(itemsize, 8)
    if row_tile is None:
        row_tile = 512                                       # near the HBM-roofline knee
    row_tile = max(sub, _round_up(row_tile, sub))
    # Keep >= ~4 grid steps whenever rows allow (DMA/compute overlap; megacore
    # sharding on v7x); otherwise shrink to the padded row count.
    if R >= 4 * sub:
        row_tile = min(row_tile, _round_up(pl.cdiv(R, 4), sub))
    row_tile = min(row_tile, _round_up(R, sub))
    assert row_tile % sub == 0

    # Pad rows to a tile multiple and features to D_pad.  Zero rows are
    # numerically safe (var + eps > 0); zero feature columns are exact because
    # LN stats divide by the true D and the padded weight rows/cols are zero.
    R_pad = _round_up(R, row_tile)
    x2p = x2
    if R_pad != R or D_pad != D:
        x2p = jnp.pad(x2, ((0, R_pad - R), (0, D_pad - D)))
    grid = (R_pad // row_tile,)

    w_bytes = (prep["w1t"].size * prep["w1t"].dtype.itemsize
               + prep["w2t"].size * prep["w2t"].dtype.itemsize)
    bias_bytes = (prep["b1"].size + prep["b2"].size) * 4

    if vmem_limit_bytes is None:
        tile_bytes = row_tile * D_pad * itemsize
        temp_bytes = 4 * row_tile * (D_pad + H_pad) * 4      # f32 intermediates
        budget = (4 * tile_bytes                              # in+out, double-buffered
                  + 2 * (w_bytes + bias_bytes)                # worst case: double-buffered
                  + temp_bytes + (4 << 20))                   # slack
        # Clamp below v7x's 64 MiB physical per-TC VMEM to leave headroom.
        vmem_limit_bytes = max(16 << 20, min(budget, 48 << 20))

    cost = pl.CostEstimate(
        flops=4 * R_pad * D_pad * H_pad,                     # two matmuls, 2*M*N*K each
        transcendentals=R_pad,                               # one rsqrt per row
        bytes_accessed=2 * R_pad * D_pad * itemsize + w_bytes + bias_bytes,
    )

    kernel = functools.partial(_mixer_kernel, inv_d=1.0 / D)

    def _run(single_buffer_weights):
        const_kwargs = {}
        if single_buffer_weights:
            # Constant index_map => resident operand; single-buffer it so the
            # weights aren't charged twice against VMEM (matters on v7x).
            const_kwargs = dict(pipeline_mode=pl.Buffered(1))
        const = lambda shape: pl.BlockSpec(shape, lambda i: (0, 0), **const_kwargs)
        return pl.pallas_call(
            kernel,
            out_shape=jax.ShapeDtypeStruct((R_pad, D_pad), x2.dtype),
            grid_spec=pltpu.PrefetchScalarGridSpec(
                num_scalar_prefetch=0,
                grid=grid,
                in_specs=[
                    pl.BlockSpec((row_tile, D_pad), lambda i: (i, 0)),  # x row tile
                    const((D_pad, H_pad)),                              # W1^T (gamma folded)
                    const((1, H_pad)),                                  # b1 (beta folded)
                    const((H_pad, D_pad)),                              # W2^T
                    const((1, D_pad)),                                  # b2
                ],
                out_specs=pl.BlockSpec((row_tile, D_pad), lambda i: (i, 0)),
            ),
            compiler_params=pltpu.CompilerParams(
                dimension_semantics=("parallel",),            # shard row grid across TCs
                vmem_limit_bytes=vmem_limit_bytes,
            ),
            cost_estimate=cost,
        )(x2p, prep["w1t"], prep["b1"], prep["w2t"], prep["b2"])

    try:
        out = _run(single_buffer_weights=True)
    except Exception:
        # pipeline_mode=pl.Buffered(1) unsupported in this jax build; default
        # double-buffered resident weights are functionally identical.
        out = _run(single_buffer_weights=False)

    if R_pad != R or D_pad != D:
        out = out[:R, :D]
    return out.reshape(orig_shape)


def init_params(key, in_dim, mlp_ratio=1):
    """Matches the module init: trunc_normal(std=0.02) weights, zero biases,
    LayerNorm gamma=1 / beta=0.  (torch layout: w1 [H,D], w2 [D,H])."""
    hidden = int(in_dim * mlp_ratio)
    k1, k2 = jax.random.split(key)
    w1 = jax.random.truncated_normal(k1, -2.0, 2.0, (hidden, in_dim), jnp.float32) * 0.02
    w2 = jax.random.truncated_normal(k2, -2.0, 2.0, (in_dim, hidden), jnp.float32) * 0.02
    return {
        "gamma": jnp.ones((in_dim,), jnp.float32),
        "beta": jnp.zeros((in_dim,), jnp.float32),
        "w1": w1,
        "b1": jnp.zeros((hidden,), jnp.float32),
        "w2": w2,
        "b2": jnp.zeros((in_dim,), jnp.float32),
    }


def _reference(x, p):
    """Pure-JAX f32 reference matching the PyTorch module (f32 matmuls)."""
    xf = x.astype(jnp.float32)
    mean = jnp.mean(xf, axis=-1, keepdims=True)
    var = jnp.mean((xf - mean) ** 2, axis=-1, keepdims=True)
    xn = (xf - mean) * jax.lax.rsqrt(var + LN_EPS) * p["gamma"] + p["beta"]
    h = jnp.dot(xn, p["w1"].T, precision=jax.lax.Precision.HIGHEST) + p["b1"]
    h = jnp.maximum(h, 0.0)
    y = jnp.dot(h, p["w2"].T, precision=jax.lax.Precision.HIGHEST) + p["b2"]
    return (xf + y).astype(x.dtype)


if __name__ == "__main__":
    key = jax.random.PRNGKey(0)
    kx, kp, kg, kb, kx2 = jax.random.split(key, 5)

    # ---- Case 1: lane-dense in_dim = 16*16 = 256 (MixVPR mixes over H*W) ----
    B, C, HW = 2, 64, 16 * 16
    x = jax.random.normal(kx, (B, C, HW), jnp.float32)
    params = init_params(kp, in_dim=HW, mlp_ratio=1)
    # Non-trivial affine so the gamma/beta -> W1/b1 fold is actually exercised.
    params["gamma"] = 1.0 + 0.1 * jax.random.normal(kg, (HW,), jnp.float32)
    params["beta"] = 0.05 * jax.random.normal(kb, (HW,), jnp.float32)

    ref32 = _reference(x, params)

    # f32-weight kernel: validates the fold / padding / single-pass-LN algebra.
    prep_f32 = prepare_params(params, matmul_dtype=jnp.float32)
    out_f32 = jax.block_until_ready(feature_mixer_layer(x, prep_f32))
    assert out_f32.shape == x.shape and out_f32.dtype == x.dtype
    assert jnp.allclose(out_f32, ref32, atol=5e-3, rtol=5e-3), \
        "f32-weight kernel mismatch vs f32 reference"

    # bf16-weight kernel (production path; bf16 MXU operands, f32 accumulate).
    prep_bf16 = prepare_params(params)
    out_bf16 = jax.block_until_ready(feature_mixer_layer(x, prep_bf16))
    assert out_bf16.shape == x.shape and out_bf16.dtype == x.dtype
    assert jnp.allclose(out_bf16, ref32, atol=5e-2, rtol=5e-2), \
        "bf16-weight kernel mismatch vs f32 reference"

    # ---- Case 2: in_dim = 20*20 = 400 (not 128-aligned) -> lane-padding path ----
    B2, C2, HW2 = 2, 8, 20 * 20
    xb = jax.random.normal(kx2, (B2, C2, HW2), jnp.float32)
    params2 = init_params(jax.random.PRNGKey(1), in_dim=HW2, mlp_ratio=1)
    prep2 = prepare_params(params2, matmul_dtype=jnp.float32)
    out2 = jax.block_until_ready(feature_mixer_layer(xb, prep2))
    assert out2.shape == xb.shape
    assert jnp.allclose(out2, _reference(xb, params2), atol=5e-3, rtol=5e-3), \
        "padded-feature-dim kernel mismatch vs f32 reference"

    print("KERNEL_OK")
</pallas_src>

<mosaic_0001>
module attributes {stable_mosaic.version = 11 : i64} {
  func.func @_mixer_kernel(%arg0: i32, %arg1: memref<32x256xf32, #tpu.memory_space<vmem>>, %arg2: memref<256x256xf32, #tpu.memory_space<vmem>>, %arg3: memref<1x256xf32, #tpu.memory_space<vmem>>, %arg4: memref<256x256xf32, #tpu.memory_space<vmem>>, %arg5: memref<1x256xf32, #tpu.memory_space<vmem>>, %arg6: memref<32x256xf32, #tpu.memory_space<vmem>>) attributes {dimension_semantics = [#tpu.dimension_semantics<parallel>], iteration_bounds = array<i64: 4>, scalar_prefetch = 0 : i64, scratch_operands = 0 : i64, tpu.core_type = #tpu.core_type<tc>, window_params = [{transform_indices = @transform_0, window_bounds = array<i64: 32, 256>}, {pipeline_mode = #tpu.pipeline_mode<synchronous>, transform_indices = @transform_1, window_bounds = array<i64: 256, 256>}, {pipeline_mode = #tpu.pipeline_mode<synchronous>, transform_indices = @transform_2, window_bounds = array<i64: 1, 256>}, {pipeline_mode = #tpu.pipeline_mode<synchronous>, transform_indices = @transform_3, window_bounds = array<i64: 256, 256>}, {pipeline_mode = #tpu.pipeline_mode<synchronous>, transform_indices = @transform_4, window_bounds = array<i64: 1, 256>}, {transform_indices = @transform_5, window_bounds = array<i64: 32, 256>}]} {
    %c0 = arith.constant 0 : index
    %c0_0 = arith.constant 0 : index
    %0 = vector.load %arg1[%c0, %c0_0] : memref<32x256xf32, #tpu.memory_space<vmem>>, vector<32x256xf32>
    %cst = arith.constant dense<0.000000e+00> : vector<32xf32>
    %1 = vector.multi_reduction <add>, %0, %cst [1] : vector<32x256xf32> to vector<32xf32>
    %2 = vector.shape_cast %1 : vector<32xf32> to vector<32x1xf32>
    %3 = arith.mulf %0, %0 : vector<32x256xf32>
    %cst_1 = arith.constant dense<0.000000e+00> : vector<32xf32>
    %4 = vector.multi_reduction <add>, %3, %cst_1 [1] : vector<32x256xf32> to vector<32xf32>
    %5 = vector.shape_cast %4 : vector<32xf32> to vector<32x1xf32>
    %cst_2 = arith.constant 3.906250e-03 : f32
    %6 = vector.broadcast %cst_2 : f32 to vector<32x1xf32>
    %7 = arith.mulf %2, %6 : vector<32x1xf32>
    %cst_3 = arith.constant 3.906250e-03 : f32
    %8 = vector.broadcast %cst_3 : f32 to vector<32x1xf32>
    %9 = arith.mulf %5, %8 : vector<32x1xf32>
    %10 = arith.mulf %7, %7 : vector<32x1xf32>
    %11 = arith.subf %9, %10 : vector<32x1xf32>
    %cst_4 = arith.constant 0.000000e+00 : f32
    %12 = vector.broadcast %cst_4 : f32 to vector<32x1xf32>
    %13 = arith.maximumf %11, %12 : vector<32x1xf32>
    %14 = vector.broadcast %7 : vector<32x1xf32> to vector<32x256xf32>
    %15 = arith.subf %0, %14 : vector<32x256xf32>
    %cst_5 = arith.constant 9.99999974E-6 : f32
    %16 = vector.broadcast %cst_5 : f32 to vector<32x1xf32>
    %17 = arith.addf %13, %16 : vector<32x1xf32>
    %18 = math.rsqrt %17 : vector<32x1xf32>
    %19 = vector.broadcast %18 : vector<32x1xf32> to vector<32x256xf32>
    %20 = arith.mulf %15, %19 : vector<32x256xf32>
    %c0_6 = arith.constant 0 : index
    %c0_7 = arith.constant 0 : index
    %21 = vector.load %arg2[%c0_6, %c0_7] : memref<256x256xf32, #tpu.memory_space<vmem>>, vector<256x256xf32>
    %cst_8 = arith.constant dense<0.000000e+00> : vector<32x256xf32>
    %22 = tpu.matmul %20, %21, %cst_8 {dimension_numbers = #tpu.dot_dimension_numbers<[1], [0], [0], [1], [0, 0, 1, 1], [], []>} : vector<32x256xf32>, vector<256x256xf32>, vector<32x256xf32> -> vector<32x256xf32>
    %c0_9 = arith.constant 0 : index
    %c0_10 = arith.constant 0 : index
    %23 = vector.load %arg3[%c0_9, %c0_10] : memref<1x256xf32, #tpu.memory_space<vmem>>, vector<1x256xf32>
    %24 = vector.broadcast %23 : vector<1x256xf32> to vector<32x256xf32>
    %25 = arith.addf %22, %24 : vector<32x256xf32>
    %cst_11 = arith.constant 0.000000e+00 : f32
    %26 = vector.broadcast %cst_11 : f32 to vector<32x256xf32>
    %27 = arith.maximumf %25, %26 : vector<32x256xf32>
    %c0_12 = arith.constant 0 : index
    %c0_13 = arith.constant 0 : index
    %28 = vector.load %arg4[%c0_12, %c0_13] : memref<256x256xf32, #tpu.memory_space<vmem>>, vector<256x256xf32>
    %cst_14 = arith.constant dense<0.000000e+00> : vector<32x256xf32>
    %29 = tpu.matmul %27, %28, %cst_14 {dimension_numbers = #tpu.dot_dimension_numbers<[1], [0], [0], [1], [0, 0, 1, 1], [], []>} : vector<32x256xf32>, vector<256x256xf32>, vector<32x256xf32> -> vector<32x256xf32>
    %c0_15 = arith.constant 0 : index
    %c0_16 = arith.constant 0 : index
    %30 = vector.load %arg5[%c0_15, %c0_16] : memref<1x256xf32, #tpu.memory_space<vmem>>, vector<1x256xf32>
    %31 = vector.broadcast %30 : vector<1x256xf32> to vector<32x256xf32>
    %32 = arith.addf %29, %31 : vector<32x256xf32>
    %c0_17 = arith.constant 0 : index
    %c0_18 = arith.constant 0 : index
    %33 = vector.load %arg1[%c0_17, %c0_18] : memref<32x256xf32, #tpu.memory_space<vmem>>, vector<32x256xf32>
    %34 = arith.addf %33, %32 : vector<32x256xf32>
    %c0_19 = arith.constant 0 : index
    %c0_20 = arith.constant 0 : index
    %35 = vector.load %arg6[%c0_19, %c0_20] : memref<32x256xf32, #tpu.memory_space<vmem>>, vector<32x256xf32>
    tpu.vector_store %arg6[%c0_19, %c0_20], %34 {strides = array<i32>} : memref<32x256xf32, #tpu.memory_space<vmem>>, vector<32x256xf32>,
    return
  }
  func.func @transform_0(%arg0: i32) -> (i32, i32) {
    %c0_i32 = arith.constant 0 : i32
    %c0_i32_0 = arith.constant 0 : i32
    return %arg0, %c0_i32 : i32, i32
  }
  func.func @transform_1(%arg0: i32) -> (i32, i32) {
    %c0_i32 = arith.constant 0 : i32
    %c0_i32_0 = arith.constant 0 : i32
    %c0_i32_1 = arith.constant 0 : i32
    return %c0_i32, %c0_i32_0 : i32, i32
  }
  func.func @transform_2(%arg0: i32) -> (i32, i32) {
    %c0_i32 = arith.constant 0 : i32
    %c0_i32_0 = arith.constant 0 : i32
    %c0_i32_1 = arith.constant 0 : i32
    return %c0_i32, %c0_i32_0 : i32, i32
  }
  func.func @transform_3(%arg0: i32) -> (i32, i32) {
    %c0_i32 = arith.constant 0 : i32
    %c0_i32_0 = arith.constant 0 : i32
    %c0_i32_1 = arith.constant 0 : i32
    return %c0_i32, %c0_i32_0 : i32, i32
  }
  func.func @transform_4(%arg0: i32) -> (i32, i32) {
    %c0_i32 = arith.constant 0 : i32
    %c0_i32_0 = arith.constant 0 : i32
    %c0_i32_1 = arith.constant 0 : i32
    return %c0_i32, %c0_i32_0 : i32, i32
  }
  func.func @transform_5(%arg0: i32) -> (i32, i32) {
    %c0_i32 = arith.constant 0 : i32
    %c0_i32_0 = arith.constant 0 : i32
    return %arg0, %c0_i32 : i32, i32
  }
}

module attributes {stable_mosaic.version = 11 : i64} {
  func.func @_mixer_kernel(%arg0: i32, %arg1: memref<32x256xf32, #tpu.memory_space<vmem>>, %arg2: memref<256x256xf32, #tpu.memory_space<vmem>>, %arg3: memref<1x256xf32, #tpu.memory_space<vmem>>, %arg4: memref<256x256xf32, #tpu.memory_space<vmem>>, %arg5: memref<1x256xf32, #tpu.memory_space<vmem>>, %arg6: memref<32x256xf32, #tpu.memory_space<vmem>>) attributes {dimension_semantics = [#tpu.dimension_semantics<parallel>], iteration_bounds = array<i64: 4>, scalar_prefetch = 0 : i64, scratch_operands = 0 : i64, tpu.core_type = #tpu.core_type<tc>, window_params = [{transform_indices = @transform_0, window_bounds = array<i64: 32, 256>}, {pipeline_mode = #tpu.pipeline_mode<synchronous>, transform_indices = @transform_1, window_bounds = array<i64: 256, 256>}, {pipeline_mode = #tpu.pipeline_mode<synchronous>, transform_indices = @transform_2, window_bounds = array<i64: 1, 256>}, {pipeline_mode = #tpu.pipeline_mode<synchronous>, transform_indices = @transform_3, window_bounds = array<i64: 256, 256>}, {pipeline_mode = #tpu.pipeline_mode<synchronous>, transform_indices = @transform_4, window_bounds = array<i64: 1, 256>}, {transform_indices = @transform_5, window_bounds = array<i64: 32, 256>}]} {
    %c0 = arith.constant 0 : index
    %c0_0 = arith.constant 0 : index
    %0 = vector.load %arg1[%c0, %c0_0] : memref<32x256xf32, #tpu.memory_space<vmem>>, vector<32x256xf32>
    %cst = arith.constant dense<0.000000e+00> : vector<32xf32>
    %1 = vector.multi_reduction <add>, %0, %cst [1] : vector<32x256xf32> to vector<32xf32>
    %2 = vector.shape_cast %1 : vector<32xf32> to vector<32x1xf32>
    %3 = arith.mulf %0, %0 : vector<32x256xf32>
    %cst_1 = arith.constant dense<0.000000e+00> : vector<32xf32>
    %4 = vector.multi_reduction <add>, %3, %cst_1 [1] : vector<32x256xf32> to vector<32xf32>
    %5 = vector.shape_cast %4 : vector<32xf32> to vector<32x1xf32>
    %cst_2 = arith.constant 3.906250e-03 : f32
    %6 = vector.broadcast %cst_2 : f32 to vector<32x1xf32>
    %7 = arith.mulf %2, %6 : vector<32x1xf32>
    %cst_3 = arith.constant 3.906250e-03 : f32
    %8 = vector.broadcast %cst_3 : f32 to vector<32x1xf32>
    %9 = arith.mulf %5, %8 : vector<32x1xf32>
    %10 = arith.mulf %7, %7 : vector<32x1xf32>
    %11 = arith.subf %9, %10 : vector<32x1xf32>
    %cst_4 = arith.constant 0.000000e+00 : f32
    %12 = vector.broadcast %cst_4 : f32 to vector<32x1xf32>
    %13 = arith.maximumf %11, %12 : vector<32x1xf32>
    %14 = vector.broadcast %7 : vector<32x1xf32> to vector<32x256xf32>
    %15 = arith.subf %0, %14 : vector<32x256xf32>
    %cst_5 = arith.constant 9.99999974E-6 : f32
    %16 = vector.broadcast %cst_5 : f32 to vector<32x1xf32>
    %17 = arith.addf %13, %16 : vector<32x1xf32>
    %18 = math.rsqrt %17 : vector<32x1xf32>
    %19 = vector.broadcast %18 : vector<32x1xf32> to vector<32x256xf32>
    %20 = arith.mulf %15, %19 : vector<32x256xf32>
    %c0_6 = arith.constant 0 : index
    %c0_7 = arith.constant 0 : index
    %21 = vector.load %arg2[%c0_6, %c0_7] : memref<256x256xf32, #tpu.memory_space<vmem>>, vector<256x256xf32>
    %cst_8 = arith.constant dense<0.000000e+00> : vector<32x256xf32>
    %22 = tpu.matmul %20, %21, %cst_8 {dimension_numbers = #tpu.dot_dimension_numbers<[1], [0], [0], [1], [0, 0, 1, 1], [], []>} : vector<32x256xf32>, vector<256x256xf32>, vector<32x256xf32> -> vector<32x256xf32>
    %c0_9 = arith.constant 0 : index
    %c0_10 = arith.constant 0 : index
    %23 = vector.load %arg3[%c0_9, %c0_10] : memref<1x256xf32, #tpu.memory_space<vmem>>, vector<1x256xf32>
    %24 = vector.broadcast %23 : vector<1x256xf32> to vector<32x256xf32>
    %25 = arith.addf %22, %24 : vector<32x256xf32>
    %cst_11 = arith.constant 0.000000e+00 : f32
    %26 = vector.broadcast %cst_11 : f32 to vector<32x256xf32>
    %27 = arith.maximumf %25, %26 : vector<32x256xf32>
    %c0_12 = arith.constant 0 : index
    %c0_13 = arith.constant 0 : index
    %28 = vector.load %arg4[%c0_12, %c0_13] : memref<256x256xf32, #tpu.memory_space<vmem>>, vector<256x256xf32>
    %cst_14 = arith.constant dense<0.000000e+00> : vector<32x256xf32>
    %29 = tpu.matmul %27, %28, %cst_14 {dimension_numbers = #tpu.dot_dimension_numbers<[1], [0], [0], [1], [0, 0, 1, 1], [], []>} : vector<32x256xf32>, vector<256x256xf32>, vector<32x256xf32> -> vector<32x256xf32>
    %c0_15 = arith.constant 0 : index
    %c0_16 = arith.constant 0 : index
    %30 = vector.load %arg5[%c0_15, %c0_16] : memref<1x256xf32, #tpu.memory_space<vmem>>, vector<1x256xf32>
    %31 = vector.broadcast %30 : vector<1x256xf32> to vector<32x256xf32>
    %32 = arith.addf %29, %31 : vector<32x256xf32>
    %c0_17 = arith.constant 0 : index
    %c0_18 = arith.constant 0 : index
    %33 = vector.load %arg1[%c0_17, %c0_18] : memref<32x256xf32, #tpu.memory_space<vmem>>, vector<32x256xf32>
    %34 = arith.addf %33, %32 : vector<32x256xf32>
    %c0_19 = arith.constant 0 : index
    %c0_20 = arith.constant 0 : index
    %35 = vector.load %arg6[%c0_19, %c0_20] : memref<32x256xf32, #tpu.memory_space<vmem>>, vector<32x256xf32>
    tpu.vector_store %arg6[%c0_19, %c0_20], %34 {strides = array<i32>} : memref<32x256xf32, #tpu.memory_space<vmem>>, vector<32x256xf32>,
    return
  }
  func.func @transform_0(%arg0: i32) -> (i32, i32) {
    %c0_i32 = arith.constant 0 : i32
    %c0_i32_0 = arith.constant 0 : i32
    return %arg0, %c0_i32 : i32, i32
  }
  func.func @transform_1(%arg0: i32) -> (i32, i32) {
    %c0_i32 = arith.constant 0 : i32
    %c0_i32_0 = arith.constant 0 : i32
    %c0_i32_1 = arith.constant 0 : i32
    return %c0_i32, %c0_i32_0 : i32, i32
  }
  func.func @transform_2(%arg0: i32) -> (i32, i32) {
    %c0_i32 = arith.constant 0 : i32
    %c0_i32_0 = arith.constant 0 : i32
    %c0_i32_1 = arith.constant 0 : i32
    return %c0_i32, %c0_i32_0 : i32, i32
  }
  func.func @transform_3(%arg0: i32) -> (i32, i32) {
    %c0_i32 = arith.constant 0 : i32
    %c0_i32_0 = arith.constant 0 : i32
    %c0_i32_1 = arith.constant 0 : i32
    return %c0_i32, %c0_i32_0 : i32, i32
  }
  func.func @transform_4(%arg0: i32) -> (i32, i32) {
    %c0_i32 = arith.constant 0 : i32
    %c0_i32_0 = arith.constant 0 : i32
    %c0_i32_1 = arith.constant 0 : i32
    return %c0_i32, %c0_i32_0 : i32, i32
  }
  func.func @transform_5(%arg0: i32) -> (i32, i32) {
    %c0_i32 = arith.constant 0 : i32
    %c0_i32_0 = arith.constant 0 : i32
    return %arg0, %c0_i32 : i32, i32
  }
}

</mosaic_0001>

<bundles_post_ra>
// kernel: tpu_custom_call.1
= control target key start
LH: loop header
LB: loop body
LE: loop exit
PB: predicated region body
PF: predicated region fallthrough
CT: control target
= control target key end

     0   :  { %10 = vsyncpa [#allocation3], 0  ;;  %s1547_s0 = inlined_call_operand.hbm [shape: f32[128,256], index: 0, kind: input, shape index: {}]   ;;  %s1548_s1 = inlined_call_operand.hbm [shape: f32[256,256], index: 1, kind: input, shape index: {}]   ;;  %s1549_s2 = inlined_call_operand.vmem [shape: f32[1,256], index: 2, kind: input, shape index: {}]   ;;  %s1550_s3 = inlined_call_operand.hbm [shape: f32[256,256], index: 3, kind: input, shape index: {}]   ;;  %s1551_s4 = inlined_call_operand.vmem [shape: f32[1,256], index: 4, kind: input, shape index: {}]   ;;  %s1552_s5 = inlined_call_operand.hbm [shape: f32[128,256], index: 5, kind: output, shape index: {}]  }
   0x1   :  { %12 = vsyncpa [#allocation3 + $0x1], 0 }
   0x2   :  { %13 = vsyncpa [#allocation6], 0 }
   0x3   :  { %14 = vsyncpa [#allocation4], 0 }
   0x4   :  { %16 = vsyncpa [#allocation4 + $0x1], 0  ;;  %s1247_s18 = smov 0   ;;  %s1249_s19 = smov 0  }
   0x5   :  { %s1251_s20 = smov 0   ;;  %s1253_s21 = smov 0  }
   0x6 LB: > { %s1268_s22 = sadd.s32 4294967295, %s1207_s21   ;;  %s820_s23 = sadd.s32 4294967294, %s1207_s21   ;;  %s1207_s21 = sphi %s1253_s21, %s1571_s21   ;;  %s1203_s20 = sphi %s1251_s20, %s1570_s20   ;;  %s1199_s19 = sphi %s1249_s19, %s1569_s19   ;;  %s1195_s18 = sphi %s1247_s18, %s1568_s18  }
   0x7   : > { %p42_p0 = scmp.ne.s32.totalorder %s1199_s19, %s1195_s18  ;;  %p1553_p1 = scmp.eq.s32.totalorder %s1268_s22, 0 }
   0x8   : > { %p156_p3 = scmp.eq.s32.totalorder %s820_s23, 3  ;;  %p821_p5 = scmp.ge.s32.totalorder %s1207_s21, 1 }
   0x9   : > { %p1277_p4 = por %p1553_p1, %p42_p0  ;;  %p163_p7 = scmp.lt.s32.totalorder %s1207_s21, 5 }
   0xa   : > { %p1282_p6 = por %p156_p3, %p42_p0  ;;  %s1209_s27 = smov [#allocation5]  }
   0xb   : > { %s1556_s24 = scalar_select %p1277_p4, 1, 0 }
   0xc   : > { %s1557_s25 = scalar_select %p1282_p6, 1, 0 }
   0xd   : > { %p1287_p8 = pnand %p821_p5, %p163_p7  ;;  %s175_s28 = sshll.u32 %s1209_s27, 4  ;;  %s176_s28 = int_to_ptr.vmem [resolvable:$true] %s175_s28 }
   0xe   : > { %s1210_s30 = smov [#allocation7]   ;;  %s1051_s9 = scalar_lea.hbm %s1548_s1, 8192 }
   0xf   : > { %s1558_s26 = scalar_select %p1287_p8, 1, 0 }
  0x10   : > { %p984_p9 = pneg %p1287_p8  ;;  %s191_s6 = sshll.u32 %s1210_s30, 4  ;;  %s1299_s6 = int_to_ptr.vmem [resolvable:$true] %s191_s6 }
  0x11   : > { %p1052_p11 = scmp.ne.s32.totalorder %s1548_s1, %s1051_s9  ;;  %p1058_p3 = scmp.lt.u32.totalorder %s1051_s9, %s1548_s1 }
  0x12   : > { %p1295_p10 = pnand %p984_p9, %p1553_p1 }
  0x14   : > { %p1053_p12 = pneg %p1295_p10 }
  0x16   : > { %p1054_p13 = pnand %p1053_p12, %p1052_p11 }
  0x18   : > { %p1055_p0 = pneg %p1054_p13 }
  0x1a   : > { %p1060_p5 = pnand %p1058_p3, %p1055_p0 }
  0x1c   : > { %1063 = shalt.err (!%p1060_p5)
}
  0x1d   : > { %s1064_s14 = scalar_lea.vmem %s176_s28, 8192  ;;  %p1072_p2 = scmp.lt.s32.totalorder %s176_s28, %s176_s28 }
  0x1e   : > { %p1065_p7 = scmp.ne.s32.totalorder %s176_s28, %s1064_s14  ;;  %p1073_p6 = scmp.lt.s32.totalorder %s1064_s14, %s1064_s14 }
  0x20   : > { %p1067_p9 = pnand %p1065_p7, %p1053_p12  ;;  %p1074_p4 = por %p1073_p6, %p1072_p2 }
  0x22   : > { %p1068_p1 = pneg %p1067_p9 }
  0x24   : > { %p1075_p8 = pnand %p1074_p4, %p1068_p1 }
  0x26   : > { %1078 = shalt.err (!%p1075_p8)
}
  0x27   : > { %s1211_s15 = smov 256   ;;  %s1212_s16 = smov 16  }
  0x28   : > { %987 = dma.hbm_to_vmem [thread:$0]  (!%p1295_p10), %s1548_s1, 8192, %s176_s28, [#allocation6], %s1211_s15, %s1211_s15, %s1212_s16  }
  0x29   : > { %s1079_s7 = scalar_lea.hbm %s1550_s3, 8192 }
  0x2a   : > { %p1080_p1 = scmp.ne.s32.totalorder %s1550_s3, %s1079_s7  ;;  %p1086_p6 = scmp.lt.u32.totalorder %s1079_s7, %s1550_s3 }
  0x2c   : > { %p1082_p2 = pnand %p1080_p1, %p1053_p12 }
  0x2e   : > { %p1083_p4 = pneg %p1082_p2 }
  0x30   : > { %p1088_p8 = pnand %p1086_p6, %p1083_p4 }
  0x32   : > { %1091 = shalt.err (!%p1088_p8)
}
  0x33   : > { %s1092_s28 = scalar_lea.vmem %s1299_s6, 8192  ;;  %p1100_p3 = scmp.lt.s32.totalorder %s1299_s6, %s1299_s6 }
  0x34   : > { %p1093_p11 = scmp.ne.s32.totalorder %s1299_s6, %s1092_s28  ;;  %p1101_p5 = scmp.lt.s32.totalorder %s1092_s28, %s1092_s28 }
  0x36   : > { %p1095_p13 = pnand %p1093_p11, %p1053_p12  ;;  %p1102_p7 = por %p1101_p5, %p1100_p3 }
  0x38   : > { %p1096_p0 = pneg %p1095_p13 }
  0x3a   : > { %p1103_p9 = pnand %p1102_p7, %p1096_p0 }
  0x3c   : > { %1106 = shalt.err (!%p1103_p9)
}
  0x3d   : > { %990 = dma.hbm_to_vmem [thread:$0]  (!%p1295_p10), %s1550_s3, 8192, %s1299_s6, [#allocation6], %s1211_s15, %s1211_s15, %s1212_s16  }
  0x3e   : > { %s1355_s29 = sadd.s32 1, %s1207_s21   ;;  %s29_s14 = sadd.s32 1, %s1203_s20 }
  0x3f   : > { %s26_s17 = ssub.s32 %s1207_s21, %s1355_s29  ;;  %p36_p12 = scmp.ne.s32.totalorder %s1203_s20, %s1199_s19 }
  0x40   : > { %p27_p1 = scmp.eq.s32.totalorder %s26_s17, 0  ;;  %p37_p2 = scmp.eq.s32.totalorder %s1207_s21, 0 }
  0x41   : > { %p1560_p4 = scmp.eq.s32.totalorder %s1268_s22, 3  ;;  %p1001_p8 = scmp.lt.s32.totalorder %s1207_s21, 4 }
  0x42   : > { %s1371_s27 = scalar_select %p27_p1, %s1203_s20, %s29_s14  }
  0x43   : > { %p1365_p6 = por %p1560_p4, %p36_p12  ;;  %p38_p11 = por %p37_p2, %p36_p12 }
  0x44   : > { %s208_s30 = sand.u32 1, %s1203_s20   ;;  %s841_s6 = sshll.u32 %s1207_s21, 10 }
  0x45   : > { %s825_s7 = sshll.u32 %s208_s30, 6  ;;  %s1378_s10 = scalar_lea.hbm %s1547_s0, %s841_s6 }
  0x46   : > { %s212_s11 = scalar_lea.vmem [#allocation2], %s825_s7  ;;  %p1382_p10 = pnand %p1001_p8, %p38_p11 }
  0x47   : > { %s220_s28 = sshll.u32 %s212_s11, 4  ;;  %s1386_s13 = scalar_lea.sflag [#allocation3], %s208_s30  ;;  %s1380_s28 = int_to_ptr.vmem [resolvable:$true] %s220_s28 }
  0x48   : > { %s1107_s14 = scalar_lea.hbm %s1378_s10, 1024  ;;  %p1109_p0 = pneg %p1382_p10 }
  0x49   : > { %p1108_p13 = scmp.ne.s32.totalorder %s1378_s10, %s1107_s14  ;;  %s1112_s6 = scalar_lea.hbm %s1547_s0, 4096 }
  0x4a   : > { %p1113_p7 = scmp.lt.u32.totalorder %s1378_s10, %s1547_s0  ;;  %p1114_p9 = scmp.lt.u32.totalorder %s1112_s6, %s1107_s14 }
  0x4b   : > { %p1110_p3 = pnand %p1109_p0, %p1108_p13  ;;  %p1116_p1 = scmp.lt.u32.totalorder %s1107_s14, %s1378_s10 }
  0x4c   : > { %p1115_p12 = por %p1114_p9, %p1113_p7 }
  0x4d   : > { %p1111_p5 = pneg %p1110_p3 }
  0x4e   : > { %p1117_p2 = por %p1116_p1, %p1115_p12 }
  0x50   : > { %p1118_p4 = pnand %p1117_p2, %p1111_p5 }
  0x52   : > { %1121 = shalt.err (!%p1118_p4)
}
  0x53   : > { %s1122_s30 = scalar_lea.vmem %s1380_s28, 1024  ;;  %s1213_s11 = smov [#allocation2]  }
  0x54   : > { %p1123_p8 = scmp.ne.s32.totalorder %s1380_s28, %s1122_s30  ;;  %s1127_s17 = sshll.u32 %s1213_s11, 4  ;;  %s1128_s17 = int_to_ptr.vmem [resolvable:$false] %s1127_s17 }
  0x55   : > { %s1129_s7 = scalar_lea.vmem %s1128_s17, 2048  ;;  %p1130_p3 = scmp.lt.s32.totalorder %s1380_s28, %s1128_s17 }
  0x56   : > { %p1125_p11 = pnand %p1123_p8, %p1109_p0  ;;  %p1131_p7 = scmp.lt.s32.totalorder %s1129_s7, %s1122_s30 }
  0x58   : > { %p1126_p13 = pneg %p1125_p11  ;;  %p1132_p9 = por %p1131_p7, %p1130_p3 }
  0x5a   : > { %p1133_p12 = pnand %p1132_p9, %p1126_p13 }
  0x5c   : > { %1136 = shalt.err (!%p1133_p12)
}
  0x5d   : > { %994 = dma.hbm_to_vmem [thread:$0]  (!%p1382_p10), %s1378_s10, 1024, %s1380_s28, %s1386_s13, %s1211_s15, %s1211_s15, %s1212_s16  }
  0x5e   : > { %p1563_p0 = scmp.ne.s32.totalorder %s1558_s26, 0 }
  0x5f   : > { %s1420_s14 = sand.u32 (!%p1563_p0), 1, %s1199_s19   ;;  %p1564_p5 = scmp.ne.s32.totalorder (!%p1563_p0), %s1556_s24, 0 }
  0x60   : > { %232 = sbr.rel (%p1563_p0) target bundleno = 741 (0x2e5), region = 40  ;;  %s830_s6 = sshll.u32 (!%p1563_p0), %s1420_s14, 6 }
  0x61   : > { %s235_s8 = scalar_lea.sflag (!%p1563_p0), [#allocation3], %s1420_s14  ;;  %s238_s12 = scalar_lea.vmem (!%p1563_p0), [#allocation2], %s830_s6 }
  0x67   : > { %1182 = dma.done.wait (%p1564_p5), %s235_s8, 1024  }
  0x68   : > { %1184 = vsyncadd (%p1564_p5), %s235_s8, 4294966272  ;;  %p1565_p10 = scmp.eq.s32.totalorder %s1268_s22, 0 }
  0x6a   : > { %1186 = dma.done.wait (%p1565_p10), [#allocation6], 16384   ;;  %p1566_p1 = pmov %p1565_p10 }
  0x6b   : > { %v1434_v0 = vld [vmem:[%s238_s12 + $0x10] sm:$0xff]  ;;  %v1436_v1 = vld [vmem:[%s238_s12 + $0x18] sm:$0xff]  ;;  %v1438_v2 = vld [vmem:[%s238_s12] sm:$0xff]  ;;  %s272_s10 = scalar_lea.vmem [#allocation8], %s830_s6  ;;  %s843_s13 = sshll.u32 %s1268_s22, 10 }
  0x6c   : > { %1188 = vsyncadd (%p1566_p1), [#allocation6], 4294950912  ;;  %v286_v3 = vadd.f32 %v1436_v1, %v1434_v0  ;;  %v1442_v4 = vld [vmem:[%s238_s12 + $0x8] sm:$0xff]  ;;  %v297_v5 = vmul.f32 %v1434_v0, %v1434_v0  ;;  %v298_v6 = vmul.f32 %v1436_v1, %v1436_v1  ;;  %v295_v7 = vmul.f32 %v1438_v2, %v1438_v2  ;;  %v1450_v8 = vld [vmem:[%s238_s12 + $0x20] sm:$0xff]  ;;  %s728_s28 = sshll.u32 %s272_s10, 4  ;;  %s1503_s11 = scalar_lea.hbm %s1552_s5, %s843_s13  ;;  %s1497_s28 = int_to_ptr.vmem [resolvable:$true] %s728_s28 }
  0x6d   : > { %v1452_v9 = vld [vmem:[%s238_s12 + $0x28] sm:$0xff]  ;;  %v283_v10 = vadd.f32 %v1442_v4, %v1438_v2  ;;  %v296_v11 = vmul.f32 %v1442_v4, %v1442_v4  ;;  %v1458_v12 = vld [vmem:[%s238_s12 + $0x30] sm:$0xff]  ;;  %v1460_v13 = vld [vmem:[%s238_s12 + $0x38] sm:$0xff]  ;;  %v299_v16 = vmul.f32 %v1450_v8, %v1450_v8  ;;  %s714_s22 = scalar_lea.sflag [#allocation4], %s1420_s14  ;;  %s1137_s17 = scalar_lea.vmem %s1497_s28, 1024 }
  0x6e   : > { %v360_v14 = vld [vmem:[#allocation5 + $0x8] sm:$0xff]  ;;  %287 = vadd.xlane.f32.xlu1 %v286_v3  ;;  %v306_v15 = vadd.f32 %v298_v6, %v297_v5  ;;  %v300_v17 = vmul.f32 %v1452_v9, %v1452_v9  ;;  %v362_v18 = vld [vmem:[#allocation5 + $0x18] sm:$0xff]  ;;  %v359_v19 = vld [vmem:[#allocation5] sm:$0xff]  ;;  %v301_v31 = vmul.f32 %v1458_v12, %v1458_v12  ;;  %v302_v33 = vmul.f32 %v1460_v13, %v1460_v13  ;;  %p1138_p2 = scmp.ne.s32.totalorder %s1497_s28, %s1137_s17  ;;  %s1214_s7 = smov [#allocation8]  }
  0x6f   : > { %v361_v20 = vld [vmem:[#allocation5 + $0x10] sm:$0xff]  ;;  %284 = vadd.xlane.f32.xlu0 %v283_v10  ;;  %v303_v21 = vadd.f32 %v296_v11, %v295_v7  ;;  %v844_v22 = vpack.c.bf16 %v362_v18, %v360_v14  ;;  %v364_v24 = vld [vmem:[#allocation5 + $0x28] sm:$0xff]  ;;  %v366_v25 = vld [vmem:[#allocation5 + $0x38] sm:$0xff]  ;;  %v289_v35 = vadd.f32 %v1452_v9, %v1450_v8  ;;  %v292_v43 = vadd.f32 %v1460_v13, %v1458_v12  ;;  %s1141_s6 = sshll.u32 %s1214_s7, 4  ;;  %s1142_s6 = int_to_ptr.vmem [resolvable:$false] %s1141_s6 }
  0x70   : > { %v846_v23 = vpack.c.bf16 %v361_v20, %v359_v19  ;;  %v363_v26 = vld [vmem:[#allocation5 + $0x20] sm:$0xff]  ;;  %v848_v27 = vpack.c.bf16 %v366_v25, %v364_v24  ;;  %v365_v28 = vld [vmem:[#allocation5 + $0x30] sm:$0xff]  ;;  %v368_v29 = vld [vmem:[#allocation5 + $0x48] sm:$0xff]  ;;  %v309_v32 = vadd.f32 %v300_v17, %v299_v16  ;;  %v312_v41 = vadd.f32 %v302_v33, %v301_v31  ;;  %p1139_p4 = pnand %p1138_p2, %p1365_p6  ;;  %s1143_s8 = scalar_lea.vmem %s1142_s6, 2048 }
  0x71   : > { %v370_v30 = vld [vmem:[#allocation5 + $0x58] sm:$0xff]  ;;  %845 = vmatprep.subr.bf16.mxu0 %v844_v22  ;;  %v850_v34 = vpack.c.bf16 %v365_v28, %v363_v26  ;;  %v367_v37 = vld [vmem:[#allocation5 + $0x40] sm:$0xff]  ;;  %v369_v38 = vld [vmem:[#allocation5 + $0x50] sm:$0xff]  ;;  %p1144_p11 = scmp.lt.s32.totalorder %s1497_s28, %s1142_s6  ;;  %p1145_p13 = scmp.lt.s32.totalorder %s1143_s8, %s1137_s17 }
  0x72   : > { %307 = vadd.xlane.f32.xlu1 %v306_v15  ;;  %847 = vmatpush1.bf16.msra.mxu0 %v846_v23  ;;  %v852_v36 = vpack.c.bf16 %v370_v30, %v368_v29  ;;  %v372_v39 = vld [vmem:[#allocation5 + $0x68] sm:$0xff]  ;;  %v374_v40 = vld [vmem:[#allocation5 + $0x78] sm:$0xff]  ;;  %v854_v42 = vpack.c.bf16 %v369_v38, %v367_v37  ;;  %v371_v45 = vld [vmem:[#allocation5 + $0x60] sm:$0xff]  ;;  %p1140_p8 = pneg %p1139_p4 }
  0x73   : > { %304 = vadd.xlane.f32.xlu0 %v303_v21  ;;  %849 = vmatprep.subr.bf16.mxu0 %v848_v27  ;;  %v856_v44 = vpack.c.bf16 %v374_v40, %v372_v39  ;;  %v373_v46 = vld [vmem:[#allocation5 + $0x70] sm:$0xff]  ;;  %v376_v47 = vld [vmem:[#allocation5 + $0x88] sm:$0xff]  ;;  %v378_v48 = vld [vmem:[#allocation5 + $0x98] sm:$0xff]  ;;  %p1146_p3 = por %p1145_p13, %p1144_p11 }
  0x74   : > { %v858_v49 = vpack.c.bf16 %v373_v46, %v371_v45  ;;  %v860_v50 = vpack.c.bf16 %v378_v48, %v376_v47  ;;  %v375_v51 = vld [vmem:[#allocation5 + $0x80] sm:$0xff]  ;;  %v377_v52 = vld [vmem:[#allocation5 + $0x90] sm:$0xff]  ;;  %v380_v53 = vld [vmem:[#allocation5 + $0xa8] sm:$0xff] }
  0x75   : > { %v382_v54 = vld [vmem:[#allocation5 + $0xb8] sm:$0xff]  ;;  %v862_v55 = vpack.c.bf16 %v377_v52, %v375_v51  ;;  %v379_v57 = vld [vmem:[#allocation5 + $0xa0] sm:$0xff]  ;;  %v381_v58 = vld [vmem:[#allocation5 + $0xb0] sm:$0xff]  ;;  %p1147_p7 = pnand %p1146_p3, %p1140_p8 }
  0x76   : > { %310 = vadd.xlane.f32.xlu1 %v309_v32  ;;  %851 = vmatpush1.bf16.msra.mxu0 %v850_v34  ;;  %v864_v56 = vpack.c.bf16 %v382_v54, %v380_v53  ;;  %v384_v59 = vld [vmem:[#allocation5 + $0xc8] sm:$0xff]  ;;  %v386_v60 = vld [vmem:[#allocation5 + $0xd8] sm:$0xff]  ;;  %v866_v61 = vpack.c.bf16 %v381_v58, %v379_v57  ;;  %v383_v63 = vld [vmem:[#allocation5 + $0xc0] sm:$0xff] }
  0x77   : > { %290 = vadd.xlane.f32.xlu0 %v289_v35  ;;  %853 = vmatprep.subr.bf16.mxu0 %v852_v36  ;;  %v868_v62 = vpack.c.bf16 %v386_v60, %v384_v59  ;;  %v385_v3 = vld [vmem:[#allocation5 + $0xd0] sm:$0xff]  ;;  %v388_v5 = vld [vmem:[#allocation5 + $0xe8] sm:$0xff]  ;;  %v390_v6 = vld [vmem:[#allocation5 + $0xf8] sm:$0xff] }
  0x78   : > { %v870_v7 = vpack.c.bf16 %v385_v3, %v383_v63  ;;  %v872_v10 = vpack.c.bf16 %v390_v6, %v388_v5  ;;  %v387_v11 = vld [vmem:[#allocation5 + $0xe0] sm:$0xff]  ;;  %v389_v14 = vld [vmem:[#allocation5 + $0xf0] sm:$0xff]  ;;  %v392_v15 = vld [vmem:[#allocation5 + $0x108] sm:$0xff] }
  0x79   : > { %v394_v16 = vld [vmem:[#allocation5 + $0x118] sm:$0xff]  ;;  %v874_v17 = vpack.c.bf16 %v389_v14, %v387_v11  ;;  %v391_v19 = vld [vmem:[#allocation5 + $0x100] sm:$0xff]  ;;  %v393_v20 = vld [vmem:[#allocation5 + $0x110] sm:$0xff] }
  0x7a   : > { %313 = vadd.xlane.f32.xlu1 %v312_v41  ;;  %855 = vmatpush1.bf16.msra.mxu0 %v854_v42  ;;  %v876_v18 = vpack.c.bf16 %v394_v16, %v392_v15  ;;  %v396_v21 = vld [vmem:[#allocation5 + $0x128] sm:$0xff]  ;;  %v398_v22 = vld [vmem:[#allocation5 + $0x138] sm:$0xff]  ;;  %v878_v23 = vpack.c.bf16 %v393_v20, %v391_v19  ;;  %v395_v25 = vld [vmem:[#allocation5 + $0x120] sm:$0xff] }
  0x7b   : > { %293 = vadd.xlane.f32.xlu0 %v292_v43  ;;  %857 = vmatprep.subr.bf16.mxu0 %v856_v44  ;;  %v880_v24 = vpack.c.bf16 %v398_v22, %v396_v21  ;;  %v397_v26 = vld [vmem:[#allocation5 + $0x130] sm:$0xff]  ;;  %v400_v27 = vld [vmem:[#allocation5 + $0x148] sm:$0xff]  ;;  %v402_v28 = vld [vmem:[#allocation5 + $0x158] sm:$0xff] }
  0x7c   : > { %v882_v29 = vpack.c.bf16 %v397_v26, %v395_v25  ;;  %v884_v30 = vpack.c.bf16 %v402_v28, %v400_v27  ;;  %v399_v31 = vld [vmem:[#allocation5 + $0x140] sm:$0xff]  ;;  %v401_v32 = vld [vmem:[#allocation5 + $0x150] sm:$0xff]  ;;  %v404_v33 = vld [vmem:[#allocation5 + $0x168] sm:$0xff] }
  0x7d   : > { %v406_v34 = vld [vmem:[#allocation5 + $0x178] sm:$0xff]  ;;  %v886_v35 = vpack.c.bf16 %v401_v32, %v399_v31  ;;  %v403_v37 = vld [vmem:[#allocation5 + $0x160] sm:$0xff]  ;;  %v405_v38 = vld [vmem:[#allocation5 + $0x170] sm:$0xff] }
  0x7e   : > { %859 = vmatpush1.bf16.msra.mxu0 %v858_v49  ;;  %v888_v36 = vpack.c.bf16 %v406_v34, %v404_v33  ;;  %v408_v39 = vld [vmem:[#allocation5 + $0x188] sm:$0xff]  ;;  %v410_v40 = vld [vmem:[#allocation5 + $0x198] sm:$0xff]  ;;  %v890_v41 = vpack.c.bf16 %v405_v38, %v403_v37  ;;  %v407_v43 = vld [vmem:[#allocation5 + $0x180] sm:$0xff] }
  0x7f   : > { %861 = vmatprep.subr.bf16.mxu0 %v860_v50  ;;  %v892_v42 = vpack.c.bf16 %v410_v40, %v408_v39  ;;  %v409_v44 = vld [vmem:[#allocation5 + $0x190] sm:$0xff]  ;;  %v412_v45 = vld [vmem:[#allocation5 + $0x1a8] sm:$0xff]  ;;  %v414_v46 = vld [vmem:[#allocation5 + $0x1b8] sm:$0xff] }
  0x80   : > { %v894_v47 = vpack.c.bf16 %v409_v44, %v407_v43  ;;  %v896_v48 = vpack.c.bf16 %v414_v46, %v412_v45  ;;  %v411_v49 = vld [vmem:[#allocation5 + $0x1a0] sm:$0xff]  ;;  %v413_v50 = vld [vmem:[#allocation5 + $0x1b0] sm:$0xff]  ;;  %v416_v51 = vld [vmem:[#allocation5 + $0x1c8] sm:$0xff] }
  0x81   : > { %v418_v52 = vld [vmem:[#allocation5 + $0x1d8] sm:$0xff]  ;;  %v415_v53 = vld [vmem:[#allocation5 + $0x1c0] sm:$0xff]  ;;  %v898_v54 = vpack.c.bf16 %v413_v50, %v411_v49  ;;  %v533_v59 = vld [vmem:[#allocation7 + $0x8] sm:$0xff] }
  0x82   : > { %863 = vmatpush1.bf16.msra.mxu0 %v862_v55  ;;  %v417_v55 = vld [vmem:[#allocation5 + $0x1d0] sm:$0xff]  ;;  %v422_v57 = vld [vmem:[#allocation5 + $0x1f8] sm:$0xff]  ;;  %v900_v58 = vpack.c.bf16 %v418_v52, %v416_v51  ;;  %v537_v3 = vld [vmem:[#allocation7 + $0x28] sm:$0xff] }
  0x83   : > { %865 = vmatprep.subr.bf16.mxu0 %v864_v56  ;;  %v420_v56 = vld [vmem:[#allocation5 + $0x1e8] sm:$0xff]  ;;  %v535_v60 = vld [vmem:[#allocation7 + $0x18] sm:$0xff]  ;;  %v534_v63 = vld [vmem:[#allocation7 + $0x10] sm:$0xff]  ;;  %v902_v15 = vpack.c.bf16 %v417_v55, %v415_v53 }
  0x84   : > { %v539_v5 = vld [vmem:[#allocation7 + $0x38] sm:$0xff]  ;;  %v538_v11 = vld [vmem:[#allocation7 + $0x30] sm:$0xff]  ;;  %v541_v14 = vld [vmem:[#allocation7 + $0x48] sm:$0xff] }
  0x85   : > { %v543_v16 = vld [vmem:[#allocation7 + $0x58] sm:$0xff]  ;;  %v421_v19 = vld [vmem:[#allocation5 + $0x1f0] sm:$0xff]  ;;  %v540_v22 = vld [vmem:[#allocation7 + $0x40] sm:$0xff] }
  0x86   : > { %867 = vmatpush1.bf16.msra.mxu0 %v866_v61  ;;  %v532_v61 = vld [vmem:[#allocation7] sm:$0xff]  ;;  %v916_v21 = vpack.c.bf16 %v543_v16, %v541_v14  ;;  %v547_v25 = vld [vmem:[#allocation7 + $0x78] sm:$0xff]  ;;  %v549_v31 = vld [vmem:[#allocation7 + $0x88] sm:$0xff] }
  0x87   : > { %869 = vmatprep.subr.bf16.mxu0 %v868_v62  ;;  %v908_v62 = vpack.c.bf16 %v535_v60, %v533_v59  ;;  %v910_v6 = vpack.c.bf16 %v534_v63, %v532_v61  ;;  %v551_v32 = vld [vmem:[#allocation7 + $0x98] sm:$0xff]  ;;  %v553_v37 = vld [vmem:[#allocation7 + $0xa8] sm:$0xff]  ;;  %v560_v53 = vld [vmem:[#allocation7 + $0xe0] sm:$0xff] }
  0x88   : > { %v924_v34 = vpack.c.bf16 %v551_v32, %v549_v31  ;;  %v555_v38 = vld [vmem:[#allocation7 + $0xb8] sm:$0xff]  ;;  %v557_v43 = vld [vmem:[#allocation7 + $0xc8] sm:$0xff]  ;;  %v564_v59 = vld [vmem:[#allocation7 + $0x100] sm:$0xff] }
  0x89   : > { %909 = vmatprep.subr.bf16.mxu1 %v908_v62  ;;  %v928_v40 = vpack.c.bf16 %v555_v38, %v553_v37  ;;  %v559_v44 = vld [vmem:[#allocation7 + $0xd8] sm:$0xff]  ;;  %v561_v49 = vld [vmem:[#allocation7 + $0xe8] sm:$0xff]  ;;  %v566_v60 = vld [vmem:[#allocation7 + $0x110] sm:$0xff] }
  0x8a   : > { %871 = vmatpush1.bf16.msra.mxu0 %v870_v7  ;;  %v912_v7 = vpack.c.bf16 %v539_v5, %v537_v3  ;;  %911 = vmatpush1.bf16.msra.mxu1 %v910_v6  ;;  %v932_v46 = vpack.c.bf16 %v559_v44, %v557_v43  ;;  %v563_v50 = vld [vmem:[#allocation7 + $0xf8] sm:$0xff]  ;;  %v565_v55 = vld [vmem:[#allocation7 + $0x108] sm:$0xff]  ;;  %v942_v63 = vpack.c.bf16 %v566_v60, %v564_v59  ;;  %v568_v5 = vld [vmem:[#allocation7 + $0x120] sm:$0xff] }
  0x8b   : > { %873 = vmatprep.subr.bf16.mxu0 %v872_v10  ;;  %v536_v10 = vld [vmem:[#allocation7 + $0x20] sm:$0xff]  ;;  %v936_v52 = vpack.c.bf16 %v563_v50, %v561_v49  ;;  %v569_v61 = vld [vmem:[#allocation7 + $0x128] sm:$0xff]  ;;  %v571_v62 = vld [vmem:[#allocation7 + $0x138] sm:$0xff] }
  0x8c   : > { %v914_v20 = vpack.c.bf16 %v538_v11, %v536_v10  ;;  %913 = vmatprep.subr.bf16.mxu1 %v912_v7  ;;  %v944_v3 = vpack.c.bf16 %v571_v62, %v569_v61  ;;  %v570_v6 = vld [vmem:[#allocation7 + $0x130] sm:$0xff]  ;;  %v573_v7 = vld [vmem:[#allocation7 + $0x148] sm:$0xff]  ;;  %v575_v10 = vld [vmem:[#allocation7 + $0x158] sm:$0xff] }
  0x8d   : > { %v946_v11 = vpack.c.bf16 %v570_v6, %v568_v5  ;;  %v948_v14 = vpack.c.bf16 %v575_v10, %v573_v7  ;;  %v574_v16 = vld [vmem:[#allocation7 + $0x150] sm:$0xff] }
  0x8e   : > { %875 = vmatpush1.bf16.msra.mxu0 %v874_v17  ;;  %v904_v17 = vpack.c.bf16 %v422_v57, %v420_v56  ;;  %915 = vmatpush1.bf16.msra.mxu1 %v914_v20  ;;  %v567_v56 = vld [vmem:[#allocation7 + $0x118] sm:$0xff] }
  0x8f   : > { %877 = vmatprep.subr.bf16.mxu0 %v876_v18  ;;  %v419_v18 = vld [vmem:[#allocation5 + $0x1e0] sm:$0xff]  ;;  %917 = vmatprep.subr.bf16.mxu1 %v916_v21 }
  0x90   : > { %v906_v26 = vpack.c.bf16 %v421_v19, %v419_v18  ;;  %v579_v18 = vld [vmem:[#allocation7 + $0x178] sm:$0xff]  ;;  %v576_v21 = vld [vmem:[#allocation7 + $0x160] sm:$0xff] }
  0x92   : > { %879 = vmatpush1.bf16.msra.mxu0 %v878_v23  ;;  %v542_v23 = vld [vmem:[#allocation7 + $0x50] sm:$0xff] }
  0x93   : > { %881 = vmatprep.subr.bf16.mxu0 %v880_v24  ;;  %v545_v24 = vld [vmem:[#allocation7 + $0x68] sm:$0xff]  ;;  %v918_v27 = vpack.c.bf16 %v542_v23, %v540_v22  ;;  %v578_v22 = vld [vmem:[#allocation7 + $0x170] sm:$0xff] }
  0x94   : > { %v920_v28 = vpack.c.bf16 %v547_v25, %v545_v24  ;;  %v581_v23 = vld [vmem:[#allocation7 + $0x188] sm:$0xff]  ;;  %v583_v24 = vld [vmem:[#allocation7 + $0x198] sm:$0xff]  ;;  %v954_v25 = vpack.c.bf16 %v578_v22, %v576_v21 }
  0x95   : > { %919 = vmatpush1.bf16.msra.mxu1 %v918_v27  ;;  %v580_v27 = vld [vmem:[#allocation7 + $0x180] sm:$0xff] }
  0x96   : > { %883 = vmatpush1.bf16.msra.mxu0 %v882_v29  ;;  %v544_v29 = vld [vmem:[#allocation7 + $0x60] sm:$0xff]  ;;  %921 = vmatprep.subr.bf16.mxu1 %v920_v28  ;;  %v582_v28 = vld [vmem:[#allocation7 + $0x190] sm:$0xff] }
  0x97   : > { %885 = vmatprep.subr.bf16.mxu0 %v884_v30  ;;  %v546_v30 = vld [vmem:[#allocation7 + $0x70] sm:$0xff]  ;;  %v958_v31 = vpack.c.bf16 %v582_v28, %v580_v27 }
  0x98   : > { %v922_v33 = vpack.c.bf16 %v546_v30, %v544_v29  ;;  %v585_v29 = vld [vmem:[#allocation7 + $0x1a8] sm:$0xff]  ;;  %v587_v30 = vld [vmem:[#allocation7 + $0x1b8] sm:$0xff] }
  0x99   : > { %v960_v32 = vpack.c.bf16 %v587_v30, %v585_v29 }
  0x9a   : > { %887 = vmatpush1.bf16.msra.mxu0 %v886_v35  ;;  %v548_v35 = vld [vmem:[#allocation7 + $0x80] sm:$0xff]  ;;  %923 = vmatpush1.bf16.msra.mxu1 %v922_v33 }
  0x9b   : > { %889 = vmatprep.subr.bf16.mxu0 %v888_v36  ;;  %v550_v36 = vld [vmem:[#allocation7 + $0x90] sm:$0xff]  ;;  %925 = vmatprep.subr.bf16.mxu1 %v924_v34  ;;  %v584_v33 = vld [vmem:[#allocation7 + $0x1a0] sm:$0xff] }
  0x9c   : > { %v926_v39 = vpack.c.bf16 %v550_v36, %v548_v35  ;;  %v586_v34 = vld [vmem:[#allocation7 + $0x1b0] sm:$0xff]  ;;  %v589_v35 = vld [vmem:[#allocation7 + $0x1c8] sm:$0xff]  ;;  %v591_v36 = vld [vmem:[#allocation7 + $0x1d8] sm:$0xff] }
  0x9d   : > { %v962_v37 = vpack.c.bf16 %v586_v34, %v584_v33  ;;  %v964_v38 = vpack.c.bf16 %v591_v36, %v589_v35  ;;  %v588_v35 = vld [vmem:[#allocation7 + $0x1c0] sm:$0xff]  ;;  %v590_v36 = vld [vmem:[#allocation7 + $0x1d0] sm:$0xff] }
  0x9e   : > { %891 = vmatpush1.bf16.msra.mxu0 %v890_v41  ;;  %v552_v41 = vld [vmem:[#allocation7 + $0xa0] sm:$0xff]  ;;  %927 = vmatpush1.bf16.msra.mxu1 %v926_v39 }
  0x9f   : > { %893 = vmatprep.subr.bf16.mxu0 %v892_v42  ;;  %v554_v42 = vld [vmem:[#allocation7 + $0xb0] sm:$0xff]  ;;  %929 = vmatprep.subr.bf16.mxu1 %v928_v40 }
  0xa0   : > { %v930_v45 = vpack.c.bf16 %v554_v42, %v552_v41 }
  0xa2   : > { %895 = vmatpush1.bf16.msra.mxu0 %v894_v47  ;;  %v556_v47 = vld [vmem:[#allocation7 + $0xc0] sm:$0xff]  ;;  %931 = vmatpush1.bf16.msra.mxu1 %v930_v45 }
  0xa3   : > { %897 = vmatprep.subr.bf16.mxu0 %v896_v48  ;;  %v558_v48 = vld [vmem:[#allocation7 + $0xd0] sm:$0xff]  ;;  %933 = vmatprep.subr.bf16.mxu1 %v932_v46 }
  0xa4   : > { %v934_v51 = vpack.c.bf16 %v558_v48, %v556_v47 }
  0xa6   : > { %899 = vmatpush1.bf16.msra.mxu0 %v898_v54  ;;  %v562_v54 = vld [vmem:[#allocation7 + $0xf0] sm:$0xff]  ;;  %935 = vmatpush1.bf16.msra.mxu1 %v934_v51 }
  0xa7   : > { %901 = vmatprep.subr.bf16.mxu0 %v900_v58  ;;  %v938_v57 = vpack.c.bf16 %v562_v54, %v560_v53  ;;  %937 = vmatprep.subr.bf16.mxu1 %v936_v52  ;;  %v940_v58 = vpack.c.bf16 %v567_v56, %v565_v55 }
  0xaa   : > { %903 = vmatpush1.bf16.msra.mxu0 %v902_v15  ;;  %939 = vmatpush1.bf16.msra.mxu1 %v938_v57  ;;  %v572_v15 = vld [vmem:[#allocation7 + $0x140] sm:$0xff] }
  0xab   : > { %905 = vmatprep.subr.bf16.mxu0 %v904_v17  ;;  %941 = vmatprep.subr.bf16.mxu1 %v940_v58  ;;  %v577_v17 = vld [vmem:[#allocation7 + $0x168] sm:$0xff]  ;;  %v950_v19 = vpack.c.bf16 %v574_v16, %v572_v15 }
  0xac   : > { %v952_v20 = vpack.c.bf16 %v579_v18, %v577_v17 }
  0xae   : > { %907 = vmatpush1.bf16.msra.mxu0 %v906_v26  ;;  %943 = vmatpush1.bf16.msra.mxu1 %v942_v63  ;;  %v956_v26 = vpack.c.bf16 %v583_v24, %v581_v23 }
  0xaf   : > { %945 = vmatprep.subr.bf16.mxu1 %v944_v3 }
  0xb2   : > { %947 = vmatpush1.bf16.msra.mxu1 %v946_v11 }
  0xb3   : > { %949 = vmatprep.subr.bf16.mxu1 %v948_v14 }
  0xb6   : > { %951 = vmatpush1.bf16.msra.mxu1 %v950_v19 }
  0xb7   : > { %953 = vmatprep.subr.bf16.mxu1 %v952_v20 }
  0xba   : > { %955 = vmatpush1.bf16.msra.mxu1 %v954_v25 }
  0xbb   : > { %957 = vmatprep.subr.bf16.mxu1 %v956_v26 }
  0xbe   : > { %959 = vmatpush1.bf16.msra.mxu1 %v958_v31 }
  0xbf   : > { %961 = vmatprep.subr.bf16.mxu1 %v960_v32 }
  0xc2   : > { %963 = vmatpush1.bf16.msra.mxu1 %v962_v37  ;;  %v966_v37 = vpack.c.bf16 %v590_v36, %v588_v35 }
  0xc3   : > { %965 = vmatprep.subr.bf16.mxu1 %v964_v38  ;;  %v593_v38 = vld [vmem:[#allocation7 + $0x1e8] sm:$0xff] }
  0xc6   : > { %967 = vmatpush1.bf16.msra.mxu1 %v966_v37 }
  0xfb   : > { %v288_v39 = vpop.xlane.xlu1 %287 }
  0xfc   : > { %v316_v40 = vmul.f32 0.00390625, %v288_v39  ;;  %v285_v41 = vpop.xlane.xlu0 %284  ;;  %v595_v39 = vld [vmem:[#allocation7 + $0x1f8] sm:$0xff] }
  0xfd   : > { %v315_v42 = vmul.f32 0.00390625, %v285_v41  ;;  %v592_v41 = vld [vmem:[#allocation7 + $0x1e0] sm:$0xff] }
  0xfe   : > { %v324_v43 = vmul.f32 %v316_v40, %v316_v40  ;;  %v338_v19 = vsub.f32 %v1436_v1, %v316_v40  ;;  %v337_v23 = vsub.f32 %v1434_v0, %v316_v40  ;;  %v968_v40 = vpack.c.bf16 %v595_v39, %v593_v38 }
  0xff   : > { %v308_v44 = vpop.xlane.xlu1 %307  ;;  %v323_v47 = vmul.f32 %v315_v42, %v315_v42  ;;  %v335_v16 = vsub.f32 %v1438_v2, %v315_v42  ;;  %v336_v17 = vsub.f32 %v1442_v4, %v315_v42  ;;  %v594_v42 = vld [vmem:[#allocation7 + $0x1f0] sm:$0xff] }
 0x100   : > { %v320_v45 = vmul.f32 0.00390625, %v308_v44  ;;  %v305_v46 = vpop.xlane.xlu0 %304  ;;  %969 = vmatprep.subr.bf16.mxu1 %v968_v40  ;;  %v425_v44 = vlaneseq }
 0x101   : > { %v319_v48 = vmul.f32 0.00390625, %v305_v46 }
 0x102   : > { %v328_v49 = vsub.f32 %v320_v45, %v324_v43  ;;  %v970_v43 = vpack.c.bf16 %v594_v42, %v592_v41  ;;  %v426_v45 = vshrl.u32 %v425_v44, 7 }
 0x103   : > { %v327_v50 = vsub.f32 %v319_v48, %v323_v47  ;;  %v311_v51 = vpop.xlane.xlu1 %310  ;;  %v423_v47 = vld [vmem:[%s1549_s2] sm:$0x3] }
 0x104   : > { %v332_v52 = vmax.f32 %v328_v49, 0.0  ;;  %v291_v53 = vpop.xlane.xlu0 %290  ;;  %v321_v56 = vmul.f32 0.00390625, %v311_v51  ;;  %971 = vmatpush1.bf16.msra.mxu1 %v970_v43  ;;  %v427_v46 = vsub.s32 0, %v426_v45  ;;  %v431_v48 = vsub.s32 1, %v426_v45 }
 0x105   : > { %v331_v54 = vmax.f32 %v327_v50, 0.0  ;;  %v317_v55 = vmul.f32 0.00390625, %v291_v53 }
 0x106   : > { %v344_v57 = vadd.f32 1e-05, %v332_v52  ;;  %v428_v49 = vrot.slane %v423_v47, %v427_v46  ;;  %v432_v50 = vrot.slane %v423_v47, %v431_v48 }
 0x107   : > { %v343_v58 = vadd.f32 1e-05, %v331_v54  ;;  %v325_v59 = vmul.f32 %v317_v55, %v317_v55  ;;  %v314_v60 = vpop.xlane.xlu1 %313  ;;  %v340_v24 = vsub.f32 %v1452_v9, %v317_v55  ;;  %v339_v28 = vsub.f32 %v1450_v8, %v317_v55 }
 0x108   : > { %1043 = vrsqrt.f32 %v344_v57  ;;  %v294_v61 = vpop.xlane.xlu0 %293  ;;  %v322_v3 = vmul.f32 0.00390625, %v314_v60 }
 0x109   : > { %1045 = vrsqrt.f32 %v343_v58  ;;  %v329_v62 = vsub.f32 %v321_v56, %v325_v59  ;;  %v318_v63 = vmul.f32 0.00390625, %v294_v61 }
 0x10b   : > { %v333_v5 = vmax.f32 %v329_v62, 0.0  ;;  %v326_v6 = vmul.f32 %v318_v63, %v318_v63  ;;  %v342_v29 = vsub.f32 %v1460_v13, %v318_v63  ;;  %v341_v33 = vsub.f32 %v1458_v12, %v318_v63 }
 0x10d   : > { %v345_v7 = vadd.f32 1e-05, %v333_v5  ;;  %v330_v10 = vsub.f32 %v322_v3, %v326_v6 }
 0x10f   : > { %1047 = vrsqrt.f32 %v345_v7  ;;  %v334_v11 = vmax.f32 %v330_v10, 0.0 }
 0x111   : > { %v346_v14 = vadd.f32 1e-05, %v334_v11 }
 0x112   : > { %v1044_v15 = vpop.eup %1043 }
 0x113   : > { %v1046_v18 = vpop.eup %1045  ;;  %1049 = vrsqrt.f32 %v346_v14  ;;  %v354_v22 = vmul.f32 %v1044_v15, %v338_v19  ;;  %v353_v26 = vmul.f32 %v1044_v15, %v337_v23  ;;  %v596_v19 = vld [vmem:[%s1551_s4] sm:$0x3] }
 0x114   : > { %v352_v20 = vmul.f32 %v1046_v18, %v336_v17  ;;  %v351_v21 = vmul.f32 %v1046_v18, %v335_v16 }
 0x116   : > { %499 = vmatprep.mubr.f32.mxu0 %v352_v20  ;;  %v601_v20 = vrot.slane %v596_v19, %v427_v46 }
 0x117   : > { %500 = vmatmul.mubr.f32.vlgmr.msra.gmra.mrb[0].mxu0 %v351_v21  ;;  %v605_v21 = vrot.slane %v596_v19, %v431_v48 }
 0x118   : > { %505 = vmatprep.mubr.f32.mxu0 %v354_v22 }
 0x119   : > { %v1048_v25 = vpop.eup %1047 }
 0x11a   : > { %v356_v27 = vmul.f32 %v1048_v25, %v340_v24  ;;  %v355_v31 = vmul.f32 %v1048_v25, %v339_v28 }
 0x11b   : > { %506 = vmatmul.mubr.f32.gmra.mrb[2].mxu0 %v353_v26 }
 0x11c   : > { %511 = vmatprep.mubr.f32.mxu0 %v356_v27 }
 0x11d   : > { %v1050_v30 = vpop.eup %1049 }
 0x11e   : > { %v358_v32 = vmul.f32 %v1050_v30, %v342_v29  ;;  %v357_v34 = vmul.f32 %v1050_v30, %v341_v33 }
 0x11f   : > { %512 = vmatmul.mubr.f32.gmra.mrb[4].mxu0 %v355_v31 }
 0x120   : > { %517 = vmatprep.mubr.f32.mxu0 %v358_v32 }
 0x123   : > { %518 = vmatmul.mubr.f32.gmra.mrb[6].mxu0 %v357_v34 }
 0x1ea   : > { %v501_v51 = vpop.f32.mrb[0].mxu0 }
 0x1eb   : > { %v502_v52 = vadd.f32 %v501_v51, %v428_v49  ;;  %v503_v53 = vpop.f32.mrb[1].mxu0 }
 0x1ec   : > { %v504_v54 = vadd.f32 %v503_v53, %v432_v50 }
 0x1ed   : > { %v524_v57 = vmax.f32 %v502_v52, 0.0 }
 0x1ee   : > { %v507_v55 = vpop.f32.mrb[2].mxu0  ;;  %v525_v56 = vmax.f32 %v504_v54, 0.0 }
 0x1ef   : > { %v508_v58 = vadd.f32 %v507_v55, %v428_v49  ;;  %v509_v59 = vpop.f32.mrb[3].mxu0 }
 0x1f0   : > { %v510_v60 = vadd.f32 %v509_v59, %v432_v50  ;;  %672 = vmatprep.mubr.f32.mxu1 %v525_v56 }
 0x1f1   : > { %673 = vmatmul.mubr.f32.vlgmr.msra.gmra.mrb[0].mxu1 %v524_v57  ;;  %v526_v63 = vmax.f32 %v508_v58, 0.0 }
 0x1f2   : > { %v527_v61 = vmax.f32 %v510_v60, 0.0  ;;  %v513_v62 = vpop.f32.mrb[4].mxu0 }
 0x1f3   : > { %v514_v3 = vadd.f32 %v513_v62, %v428_v49  ;;  %v515_v5 = vpop.f32.mrb[5].mxu0 }
 0x1f4   : > { %v516_v6 = vadd.f32 %v515_v5, %v432_v50  ;;  %678 = vmatprep.mubr.f32.mxu1 %v527_v61 }
 0x1f5   : > { %679 = vmatmul.mubr.f32.gmra.mrb[2].mxu1 %v526_v63  ;;  %v528_v11 = vmax.f32 %v514_v3, 0.0 }
 0x1f6   : > { %v529_v7 = vmax.f32 %v516_v6, 0.0  ;;  %v519_v10 = vpop.f32.mrb[6].mxu0 }
 0x1f7   : > { %v520_v14 = vadd.f32 %v519_v10, %v428_v49  ;;  %v521_v15 = vpop.f32.mrb[7].mxu0 }
 0x1f8   : > { %v522_v16 = vadd.f32 %v521_v15, %v432_v50  ;;  %684 = vmatprep.mubr.f32.mxu1 %v529_v7 }
 0x1f9   : > { %685 = vmatmul.mubr.f32.gmra.mrb[4].mxu1 %v528_v11  ;;  %v530_v18 = vmax.f32 %v520_v14, 0.0 }
 0x1fa   : > { %v531_v17 = vmax.f32 %v522_v16, 0.0 }
 0x1fc   : > { %690 = vmatprep.mubr.f32.mxu1 %v531_v17 }
 0x1fd   : > { %691 = vmatmul.mubr.f32.gmra.mrb[6].mxu1 %v530_v18 }
 0x2c4   : > { %v674_v22 = vpop.f32.mrb[0].mxu1 }
 0x2c5   : > { %v675_v23 = vadd.f32 %v674_v22, %v601_v20  ;;  %v676_v24 = vpop.f32.mrb[1].mxu1 }
 0x2c6   : > { %v677_v25 = vadd.f32 %v676_v24, %v605_v21 }
 0x2c7   : > { %v697_v26 = vadd.f32 %v675_v23, %v1438_v2 }
 0x2c8   : > { %v698_v27 = vadd.f32 %v677_v25, %v1442_v4  ;;  %v680_v28 = vpop.f32.mrb[2].mxu1 }
 0x2c9   : > { %705 = vst [vmem:[%s272_s10] sm:$0xff] %v697_v26  ;;  %v681_v29 = vadd.f32 %v680_v28, %v601_v20  ;;  %v682_v30 = vpop.f32.mrb[3].mxu1 }
 0x2ca   : > { %706 = vst [vmem:[%s272_s10 + $0x8] sm:$0xff] %v698_v27  ;;  %v683_v31 = vadd.f32 %v682_v30, %v605_v21 }
 0x2cb   : > { %v699_v32 = vadd.f32 %v681_v29, %v1434_v0 }
 0x2cc   : > { %v700_v33 = vadd.f32 %v683_v31, %v1436_v1  ;;  %v686_v34 = vpop.f32.mrb[4].mxu1 }
 0x2cd   : > { %707 = vst [vmem:[%s272_s10 + $0x10] sm:$0xff] %v699_v32  ;;  %v687_v35 = vadd.f32 %v686_v34, %v601_v20  ;;  %v688_v36 = vpop.f32.mrb[5].mxu1 }
 0x2ce   : > { %708 = vst [vmem:[%s272_s10 + $0x18] sm:$0xff] %v700_v33  ;;  %v689_v2 = vadd.f32 %v688_v36, %v605_v21 }
 0x2cf   : > { %v701_v4 = vadd.f32 %v687_v35, %v1450_v8 }
 0x2d0   : > { %v702_v37 = vadd.f32 %v689_v2, %v1452_v9  ;;  %v692_v38 = vpop.f32.mrb[6].mxu1 }
 0x2d1   : > { %709 = vst [vmem:[%s272_s10 + $0x20] sm:$0xff] %v701_v4  ;;  %v693_v39 = vadd.f32 %v692_v38, %v601_v20  ;;  %v694_v0 = vpop.f32.mrb[7].mxu1 }
 0x2d2   : > { %710 = vst [vmem:[%s272_s10 + $0x28] sm:$0xff] %v702_v37  ;;  %v695_v1 = vadd.f32 %v694_v0, %v605_v21 }
 0x2d3   : > { %v703_v40 = vadd.f32 %v693_v39, %v1458_v12 }
 0x2d4   : > { %v704_v8 = vadd.f32 %v695_v1, %v1460_v13 }
 0x2d5   : > { %711 = vst [vmem:[%s272_s10 + $0x30] sm:$0xff] %v703_v40 }
 0x2d6   : > { %712 = vst [vmem:[%s272_s10 + $0x38] sm:$0xff] %v704_v8 }
 0x2d7   : > { %1150 = shalt.err (!%p1147_p7)
}
 0x2d8   : > { %s1151_s12 = scalar_lea.hbm %s1503_s11, 1024  ;;  %s1155_s15 = scalar_lea.hbm %s1552_s5, 4096 }
 0x2d9   : > { %p1152_p9 = scmp.ne.s32.totalorder %s1503_s11, %s1151_s12  ;;  %p1156_p5 = scmp.lt.u32.totalorder %s1503_s11, %s1552_s5 }
 0x2da   : > { %p1157_p10 = scmp.lt.u32.totalorder %s1155_s15, %s1151_s12  ;;  %p1159_p2 = scmp.lt.u32.totalorder %s1151_s12, %s1503_s11 }
 0x2db   : > { %p1153_p12 = pnand %p1152_p9, %p1365_p6 }
 0x2dc   : > { %p1158_p1 = por %p1157_p10, %p1156_p5 }
 0x2dd   : > { %p1154_p0 = pneg %p1153_p12 }
 0x2de   : > { %p1160_p4 = por %p1159_p2, %p1158_p1 }
 0x2e0   : > { %p1161_p8 = pnand %p1160_p4, %p1154_p0 }
 0x2e2   : > { %1164 = shalt.err (!%p1161_p8)
}
 0x2e3   : > { %s1215_s13 = smov 256   ;;  %s1216_s9 = smov 16  }
 0x2e4   : > { %982 = dma.vmem_to_hbm [thread:$0]  (%p1365_p6), %s1497_s28, 1024, %s1503_s11, %s714_s22, %s1215_s13, %s1215_s13, %s1216_s9  }
 0x2e5 PF: > { %p1004_p11 = scmp.ge.s32.totalorder %s1207_s21, 2  ;;  %s743_s30 = sand.u32 1, %s1195_s18  }
 0x2e6   : > { %p1567_p13 = scmp.ne.s32.totalorder %s1557_s25, 0  ;;  %s744_s17 = scalar_lea.sflag [#allocation4], %s743_s30 }
 0x2e8   : > { %p996_p3 = pnand %p1004_p11, %p1567_p13 }
 0x2ea   : > { %1190 = dma.done.wait (!%p996_p3), %s744_s17, 1024  }
 0x2eb   : > { %1192 = vsyncadd (!%p996_p3), %s744_s17, 4294966272  ;;  %p19_p7 = scmp.ge.s32.totalorder %s1355_s29, 6   ;;  %s1568_s18 = smov %s1199_s19 }
 0x2ec   : > { %s1569_s19 = smov %s1203_s20  ;;  %s1570_s20 = smov %s1371_s27 }
 0x2ed   : > { %s1571_s21 = smov %s1355_s29  ;;  %21 = sbr.rel (!%p19_p7) target bundleno = 6 (0x6), region = 93 }
 0x2f4   :  { %749 = vsyncpa [#allocation3], 1 }
 0x2f5   :  { %751 = vsyncpa [#allocation3 + $0x1], 1 }
 0x2f6   :  { %752 = vsyncpa [#allocation6], 1 }
 0x2f7   :  { %753 = vsyncpa [#allocation4], 1 }
 0x2f8   :  { %755 = vsyncpa [#allocation4 + $0x1], 1 }

// kernel: tpu_custom_call.1
= control target key start
LH: loop header
LB: loop body
LE: loop exit
PB: predicated region body
PF: predicated region fallthrough
CT: control target
= control target key end

     0   :  { %10 = vsyncpa [#allocation3], 0  ;;  %s1547_s0 = inlined_call_operand.hbm [shape: f32[128,256], index: 0, kind: input, shape index: {}]   ;;  %s1548_s1 = inlined_call_operand.hbm [shape: f32[256,256], index: 1, kind: input, shape index: {}]   ;;  %s1549_s2 = inlined_call_operand.vmem [shape: f32[1,256], index: 2, kind: input, shape index: {}]   ;;  %s1550_s3 = inlined_call_operand.hbm [shape: f32[256,256], index: 3, kind: input, shape index: {}]   ;;  %s1551_s4 = inlined_call_operand.vmem [shape: f32[1,256], index: 4, kind: input, shape index: {}]   ;;  %s1552_s5 = inlined_call_operand.hbm [shape: f32[128,256], index: 5, kind: output, shape index: {}]  }
   0x1   :  { %12 = vsyncpa [#allocation3 + $0x1], 0 }
   0x2   :  { %13 = vsyncpa [#allocation6], 0 }
   0x3   :  { %14 = vsyncpa [#allocation4], 0 }
   0x4   :  { %16 = vsyncpa [#allocation4 + $0x1], 0  ;;  %s1247_s18 = smov 0   ;;  %s1249_s19 = smov 0  }
   0x5   :  { %s1251_s20 = smov 0   ;;  %s1253_s21 = smov 0  }
   0x6 LB: > { %s1268_s22 = sadd.s32 4294967295, %s1207_s21   ;;  %s820_s23 = sadd.s32 4294967294, %s1207_s21   ;;  %s1207_s21 = sphi %s1253_s21, %s1571_s21   ;;  %s1203_s20 = sphi %s1251_s20, %s1570_s20   ;;  %s1199_s19 = sphi %s1249_s19, %s1569_s19   ;;  %s1195_s18 = sphi %s1247_s18, %s1568_s18  }
   0x7   : > { %p42_p0 = scmp.ne.s32.totalorder %s1199_s19, %s1195_s18  ;;  %p1553_p1 = scmp.eq.s32.totalorder %s1268_s22, 0 }
   0x8   : > { %p156_p3 = scmp.eq.s32.totalorder %s820_s23, 3  ;;  %p821_p5 = scmp.ge.s32.totalorder %s1207_s21, 1 }
   0x9   : > { %p1277_p4 = por %p1553_p1, %p42_p0  ;;  %p163_p7 = scmp.lt.s32.totalorder %s1207_s21, 5 }
   0xa   : > { %p1282_p6 = por %p156_p3, %p42_p0  ;;  %s1209_s27 = smov [#allocation5]  }
   0xb   : > { %s1556_s24 = scalar_select %p1277_p4, 1, 0 }
   0xc   : > { %s1557_s25 = scalar_select %p1282_p6, 1, 0 }
   0xd   : > { %p1287_p8 = pnand %p821_p5, %p163_p7  ;;  %s175_s28 = sshll.u32 %s1209_s27, 4  ;;  %s176_s28 = int_to_ptr.vmem [resolvable:$true] %s175_s28 }
   0xe   : > { %s1210_s30 = smov [#allocation7]   ;;  %s1051_s9 = scalar_lea.hbm %s1548_s1, 8192 }
   0xf   : > { %s1558_s26 = scalar_select %p1287_p8, 1, 0 }
  0x10   : > { %p984_p9 = pneg %p1287_p8  ;;  %s191_s6 = sshll.u32 %s1210_s30, 4  ;;  %s1299_s6 = int_to_ptr.vmem [resolvable:$true] %s191_s6 }
  0x11   : > { %p1052_p11 = scmp.ne.s32.totalorder %s1548_s1, %s1051_s9  ;;  %p1058_p3 = scmp.lt.u32.totalorder %s1051_s9, %s1548_s1 }
  0x12   : > { %p1295_p10 = pnand %p984_p9, %p1553_p1 }
  0x14   : > { %p1053_p12 = pneg %p1295_p10 }
  0x16   : > { %p1054_p13 = pnand %p1053_p12, %p1052_p11 }
  0x18   : > { %p1055_p0 = pneg %p1054_p13 }
  0x1a   : > { %p1060_p5 = pnand %p1058_p3, %p1055_p0 }
  0x1c   : > { %1063 = shalt.err (!%p1060_p5)
}
  0x1d   : > { %s1064_s14 = scalar_lea.vmem %s176_s28, 8192  ;;  %p1072_p2 = scmp.lt.s32.totalorder %s176_s28, %s176_s28 }
  0x1e   : > { %p1065_p7 = scmp.ne.s32.totalorder %s176_s28, %s1064_s14  ;;  %p1073_p6 = scmp.lt.s32.totalorder %s1064_s14, %s1064_s14 }
  0x20   : > { %p1067_p9 = pnand %p1065_p7, %p1053_p12  ;;  %p1074_p4 = por %p1073_p6, %p1072_p2 }
  0x22   : > { %p1068_p1 = pneg %p1067_p9 }
  0x24   : > { %p1075_p8 = pnand %p1074_p4, %p1068_p1 }
  0x26   : > { %1078 = shalt.err (!%p1075_p8)
}
  0x27   : > { %s1211_s15 = smov 256   ;;  %s1212_s16 = smov 16  }
  0x28   : > { %987 = dma.hbm_to_vmem [thread:$0]  (!%p1295_p10), %s1548_s1, 8192, %s176_s28, [#allocation6], %s1211_s15, %s1211_s15, %s1212_s16  }
  0x29   : > { %s1079_s7 = scalar_lea.hbm %s1550_s3, 8192 }
  0x2a   : > { %p1080_p1 = scmp.ne.s32.totalorder %s1550_s3, %s1079_s7  ;;  %p1086_p6 = scmp.lt.u32.totalorder %s1079_s7, %s1550_s3 }
  0x2c   : > { %p1082_p2 = pnand %p1080_p1, %p1053_p12 }
  0x2e   : > { %p1083_p4 = pneg %p1082_p2 }
  0x30   : > { %p1088_p8 = pnand %p1086_p6, %p1083_p4 }
  0x32   : > { %1091 = shalt.err (!%p1088_p8)
}
  0x33   : > { %s1092_s28 = scalar_lea.vmem %s1299_s6, 8192  ;;  %p1100_p3 = scmp.lt.s32.totalorder %s1299_s6, %s1299_s6 }
  0x34   : > { %p1093_p11 = scmp.ne.s32.totalorder %s1299_s6, %s1092_s28  ;;  %p1101_p5 = scmp.lt.s32.totalorder %s1092_s28, %s1092_s28 }
  0x36   : > { %p1095_p13 = pnand %p1093_p11, %p1053_p12  ;;  %p1102_p7 = por %p1101_p5, %p1100_p3 }
  0x38   : > { %p1096_p0 = pneg %p1095_p13 }
  0x3a   : > { %p1103_p9 = pnand %p1102_p7, %p1096_p0 }
  0x3c   : > { %1106 = shalt.err (!%p1103_p9)
}
  0x3d   : > { %990 = dma.hbm_to_vmem [thread:$0]  (!%p1295_p10), %s1550_s3, 8192, %s1299_s6, [#allocation6], %s1211_s15, %s1211_s15, %s1212_s16  }
  0x3e   : > { %s1355_s29 = sadd.s32 1, %s1207_s21   ;;  %s29_s14 = sadd.s32 1, %s1203_s20 }
  0x3f   : > { %s26_s17 = ssub.s32 %s1207_s21, %s1355_s29  ;;  %p36_p12 = scmp.ne.s32.totalorder %s1203_s20, %s1199_s19 }
  0x40   : > { %p27_p1 = scmp.eq.s32.totalorder %s26_s17, 0  ;;  %p37_p2 = scmp.eq.s32.totalorder %s1207_s21, 0 }
  0x41   : > { %p1560_p4 = scmp.eq.s32.totalorder %s1268_s22, 3  ;;  %p1001_p8 = scmp.lt.s32.totalorder %s1207_s21, 4 }
  0x42   : > { %s1371_s27 = scalar_select %p27_p1, %s1203_s20, %s29_s14  }
  0x43   : > { %p1365_p6 = por %p1560_p4, %p36_p12  ;;  %p38_p11 = por %p37_p2, %p36_p12 }
  0x44   : > { %s208_s30 = sand.u32 1, %s1203_s20   ;;  %s841_s6 = sshll.u32 %s1207_s21, 10 }
  0x45   : > { %s825_s7 = sshll.u32 %s208_s30, 6  ;;  %s1378_s10 = scalar_lea.hbm %s1547_s0, %s841_s6 }
  0x46   : > { %s212_s11 = scalar_lea.vmem [#allocation2], %s825_s7  ;;  %p1382_p10 = pnand %p1001_p8, %p38_p11 }
  0x47   : > { %s220_s28 = sshll.u32 %s212_s11, 4  ;;  %s1386_s13 = scalar_lea.sflag [#allocation3], %s208_s30  ;;  %s1380_s28 = int_to_ptr.vmem [resolvable:$true] %s220_s28 }
  0x48   : > { %s1107_s14 = scalar_lea.hbm %s1378_s10, 1024  ;;  %p1109_p0 = pneg %p1382_p10 }
  0x49   : > { %p1108_p13 = scmp.ne.s32.totalorder %s1378_s10, %s1107_s14  ;;  %s1112_s6 = scalar_lea.hbm %s1547_s0, 4096 }
  0x4a   : > { %p1113_p7 = scmp.lt.u32.totalorder %s1378_s10, %s1547_s0  ;;  %p1114_p9 = scmp.lt.u32.totalorder %s1112_s6, %s1107_s14 }
  0x4b   : > { %p1110_p3 = pnand %p1109_p0, %p1108_p13  ;;  %p1116_p1 = scmp.lt.u32.totalorder %s1107_s14, %s1378_s10 }
  0x4c   : > { %p1115_p12 = por %p1114_p9, %p1113_p7 }
  0x4d   : > { %p1111_p5 = pneg %p1110_p3 }
  0x4e   : > { %p1117_p2 = por %p1116_p1, %p1115_p12 }
  0x50   : > { %p1118_p4 = pnand %p1117_p2, %p1111_p5 }
  0x52   : > { %1121 = shalt.err (!%p1118_p4)
}
  0x53   : > { %s1122_s30 = scalar_lea.vmem %s1380_s28, 1024  ;;  %s1213_s11 = smov [#allocation2]  }
  0x54   : > { %p1123_p8 = scmp.ne.s32.totalorder %s1380_s28, %s1122_s30  ;;  %s1127_s17 = sshll.u32 %s1213_s11, 4  ;;  %s1128_s17 = int_to_ptr.vmem [resolvable:$false] %s1127_s17 }
  0x55   : > { %s1129_s7 = scalar_lea.vmem %s1128_s17, 2048  ;;  %p1130_p3 = scmp.lt.s32.totalorder %s1380_s28, %s1128_s17 }
  0x56   : > { %p1125_p11 = pnand %p1123_p8, %p1109_p0  ;;  %p1131_p7 = scmp.lt.s32.totalorder %s1129_s7, %s1122_s30 }
  0x58   : > { %p1126_p13 = pneg %p1125_p11  ;;  %p1132_p9 = por %p1131_p7, %p1130_p3 }
  0x5a   : > { %p1133_p12 = pnand %p1132_p9, %p1126_p13 }
  0x5c   : > { %1136 = shalt.err (!%p1133_p12)
}
  0x5d   : > { %994 = dma.hbm_to_vmem [thread:$0]  (!%p1382_p10), %s1378_s10, 1024, %s1380_s28, %s1386_s13, %s1211_s15, %s1211_s15, %s1212_s16  }
  0x5e   : > { %p1563_p0 = scmp.ne.s32.totalorder %s1558_s26, 0 }
  0x5f   : > { %s1420_s14 = sand.u32 (!%p1563_p0), 1, %s1199_s19   ;;  %p1564_p5 = scmp.ne.s32.totalorder (!%p1563_p0), %s1556_s24, 0 }
  0x60   : > { %232 = sbr.rel (%p1563_p0) target bundleno = 741 (0x2e5), region = 40  ;;  %s830_s6 = sshll.u32 (!%p1563_p0), %s1420_s14, 6 }
  0x61   : > { %s235_s8 = scalar_lea.sflag (!%p1563_p0), [#allocation3], %s1420_s14  ;;  %s238_s12 = scalar_lea.vmem (!%p1563_p0), [#allocation2], %s830_s6 }
  0x67   : > { %1182 = dma.done.wait (%p1564_p5), %s235_s8, 1024  }
  0x68   : > { %1184 = vsyncadd (%p1564_p5), %s235_s8, 4294966272  ;;  %p1565_p10 = scmp.eq.s32.totalorder %s1268_s22, 0 }
  0x6a   : > { %1186 = dma.done.wait (%p1565_p10), [#allocation6], 16384   ;;  %p1566_p1 = pmov %p1565_p10 }
  0x6b   : > { %v1434_v0 = vld [vmem:[%s238_s12 + $0x10] sm:$0xff]  ;;  %v1436_v1 = vld [vmem:[%s238_s12 + $0x18] sm:$0xff]  ;;  %v1438_v2 = vld [vmem:[%s238_s12] sm:$0xff]  ;;  %s272_s10 = scalar_lea.vmem [#allocation8], %s830_s6  ;;  %s843_s13 = sshll.u32 %s1268_s22, 10 }
  0x6c   : > { %1188 = vsyncadd (%p1566_p1), [#allocation6], 4294950912  ;;  %v286_v3 = vadd.f32 %v1436_v1, %v1434_v0  ;;  %v1442_v4 = vld [vmem:[%s238_s12 + $0x8] sm:$0xff]  ;;  %v297_v5 = vmul.f32 %v1434_v0, %v1434_v0  ;;  %v298_v6 = vmul.f32 %v1436_v1, %v1436_v1  ;;  %v295_v7 = vmul.f32 %v1438_v2, %v1438_v2  ;;  %v1450_v8 = vld [vmem:[%s238_s12 + $0x20] sm:$0xff]  ;;  %s728_s28 = sshll.u32 %s272_s10, 4  ;;  %s1503_s11 = scalar_lea.hbm %s1552_s5, %s843_s13  ;;  %s1497_s28 = int_to_ptr.vmem [resolvable:$true] %s728_s28 }
  0x6d   : > { %v1452_v9 = vld [vmem:[%s238_s12 + $0x28] sm:$0xff]  ;;  %v283_v10 = vadd.f32 %v1442_v4, %v1438_v2  ;;  %v296_v11 = vmul.f32 %v1442_v4, %v1442_v4  ;;  %v1458_v12 = vld [vmem:[%s238_s12 + $0x30] sm:$0xff]  ;;  %v1460_v13 = vld [vmem:[%s238_s12 + $0x38] sm:$0xff]  ;;  %v299_v16 = vmul.f32 %v1450_v8, %v1450_v8  ;;  %s714_s22 = scalar_lea.sflag [#allocation4], %s1420_s14  ;;  %s1137_s17 = scalar_lea.vmem %s1497_s28, 1024 }
  0x6e   : > { %v360_v14 = vld [vmem:[#allocation5 + $0x8] sm:$0xff]  ;;  %287 = vadd.xlane.f32.xlu1 %v286_v3  ;;  %v306_v15 = vadd.f32 %v298_v6, %v297_v5  ;;  %v300_v17 = vmul.f32 %v1452_v9, %v1452_v9  ;;  %v362_v18 = vld [vmem:[#allocation5 + $0x18] sm:$0xff]  ;;  %v359_v19 = vld [vmem:[#allocation5] sm:$0xff]  ;;  %v301_v31 = vmul.f32 %v1458_v12, %v1458_v12  ;;  %v302_v33 = vmul.f32 %v1460_v13, %v1460_v13  ;;  %p1138_p2 = scmp.ne.s32.totalorder %s1497_s28, %s1137_s17  ;;  %s1214_s7 = smov [#allocation8]  }
  0x6f   : > { %v361_v20 = vld [vmem:[#allocation5 + $0x10] sm:$0xff]  ;;  %284 = vadd.xlane.f32.xlu0 %v283_v10  ;;  %v303_v21 = vadd.f32 %v296_v11, %v295_v7  ;;  %v844_v22 = vpack.c.bf16 %v362_v18, %v360_v14  ;;  %v364_v24 = vld [vmem:[#allocation5 + $0x28] sm:$0xff]  ;;  %v366_v25 = vld [vmem:[#allocation5 + $0x38] sm:$0xff]  ;;  %v289_v35 = vadd.f32 %v1452_v9, %v1450_v8  ;;  %v292_v43 = vadd.f32 %v1460_v13, %v1458_v12  ;;  %s1141_s6 = sshll.u32 %s1214_s7, 4  ;;  %s1142_s6 = int_to_ptr.vmem [resolvable:$false] %s1141_s6 }
  0x70   : > { %v846_v23 = vpack.c.bf16 %v361_v20, %v359_v19  ;;  %v363_v26 = vld [vmem:[#allocation5 + $0x20] sm:$0xff]  ;;  %v848_v27 = vpack.c.bf16 %v366_v25, %v364_v24  ;;  %v365_v28 = vld [vmem:[#allocation5 + $0x30] sm:$0xff]  ;;  %v368_v29 = vld [vmem:[#allocation5 + $0x48] sm:$0xff]  ;;  %v309_v32 = vadd.f32 %v300_v17, %v299_v16  ;;  %v312_v41 = vadd.f32 %v302_v33, %v301_v31  ;;  %p1139_p4 = pnand %p1138_p2, %p1365_p6  ;;  %s1143_s8 = scalar_lea.vmem %s1142_s6, 2048 }
  0x71   : > { %v370_v30 = vld [vmem:[#allocation5 + $0x58] sm:$0xff]  ;;  %845 = vmatprep.subr.bf16.mxu0 %v844_v22  ;;  %v850_v34 = vpack.c.bf16 %v365_v28, %v363_v26  ;;  %v367_v37 = vld [vmem:[#allocation5 + $0x40] sm:$0xff]  ;;  %v369_v38 = vld [vmem:[#allocation5 + $0x50] sm:$0xff]  ;;  %p1144_p11 = scmp.lt.s32.totalorder %s1497_s28, %s1142_s6  ;;  %p1145_p13 = scmp.lt.s32.totalorder %s1143_s8, %s1137_s17 }
  0x72   : > { %307 = vadd.xlane.f32.xlu1 %v306_v15  ;;  %847 = vmatpush1.bf16.msra.mxu0 %v846_v23  ;;  %v852_v36 = vpack.c.bf16 %v370_v30, %v368_v29  ;;  %v372_v39 = vld [vmem:[#allocation5 + $0x68] sm:$0xff]  ;;  %v374_v40 = vld [vmem:[#allocation5 + $0x78] sm:$0xff]  ;;  %v854_v42 = vpack.c.bf16 %v369_v38, %v367_v37  ;;  %v371_v45 = vld [vmem:[#allocation5 + $0x60] sm:$0xff]  ;;  %p1140_p8 = pneg %p1139_p4 }
  0x73   : > { %304 = vadd.xlane.f32.xlu0 %v303_v21  ;;  %849 = vmatprep.subr.bf16.mxu0 %v848_v27  ;;  %v856_v44 = vpack.c.bf16 %v374_v40, %v372_v39  ;;  %v373_v46 = vld [vmem:[#allocation5 + $0x70] sm:$0xff]  ;;  %v376_v47 = vld [vmem:[#allocation5 + $0x88] sm:$0xff]  ;;  %v378_v48 = vld [vmem:[#allocation5 + $0x98] sm:$0xff]  ;;  %p1146_p3 = por %p1145_p13, %p1144_p11 }
  0x74   : > { %v858_v49 = vpack.c.bf16 %v373_v46, %v371_v45  ;;  %v860_v50 = vpack.c.bf16 %v378_v48, %v376_v47  ;;  %v375_v51 = vld [vmem:[#allocation5 + $0x80] sm:$0xff]  ;;  %v377_v52 = vld [vmem:[#allocation5 + $0x90] sm:$0xff]  ;;  %v380_v53 = vld [vmem:[#allocation5 + $0xa8] sm:$0xff] }
  0x75   : > { %v382_v54 = vld [vmem:[#allocation5 + $0xb8] sm:$0xff]  ;;  %v862_v55 = vpack.c.bf16 %v377_v52, %v375_v51  ;;  %v379_v57 = vld [vmem:[#allocation5 + $0xa0] sm:$0xff]  ;;  %v381_v58 = vld [vmem:[#allocation5 + $0xb0] sm:$0xff]  ;;  %p1147_p7 = pnand %p1146_p3, %p1140_p8 }
  0x76   : > { %310 = vadd.xlane.f32.xlu1 %v309_v32  ;;  %851 = vmatpush1.bf16.msra.mxu0 %v850_v34  ;;  %v864_v56 = vpack.c.bf16 %v382_v54, %v380_v53  ;;  %v384_v59 = vld [vmem:[#allocation5 + $0xc8] sm:$0xff]  ;;  %v386_v60 = vld [vmem:[#allocation5 + $0xd8] sm:$0xff]  ;;  %v866_v61 = vpack.c.bf16 %v381_v58, %v379_v57  ;;  %v383_v63 = vld [vmem:[#allocation5 + $0xc0] sm:$0xff] }
  0x77   : > { %290 = vadd.xlane.f32.xlu0 %v289_v35  ;;  %853 = vmatprep.subr.bf16.mxu0 %v852_v36  ;;  %v868_v62 = vpack.c.bf16 %v386_v60, %v384_v59  ;;  %v385_v3 = vld [vmem:[#allocation5 + $0xd0] sm:$0xff]  ;;  %v388_v5 = vld [vmem:[#allocation5 + $0xe8] sm:$0xff]  ;;  %v390_v6 = vld [vmem:[#allocation5 + $0xf8] sm:$0xff] }
  0x78   : > { %v870_v7 = vpack.c.bf16 %v385_v3, %v383_v63  ;;  %v872_v10 = vpack.c.bf16 %v390_v6, %v388_v5  ;;  %v387_v11 = vld [vmem:[#allocation5 + $0xe0] sm:$0xff]  ;;  %v389_v14 = vld [vmem:[#allocation5 + $0xf0] sm:$0xff]  ;;  %v392_v15 = vld [vmem:[#allocation5 + $0x108] sm:$0xff] }
  0x79   : > { %v394_v16 = vld [vmem:[#allocation5 + $0x118] sm:$0xff]  ;;  %v874_v17 = vpack.c.bf16 %v389_v14, %v387_v11  ;;  %v391_v19 = vld [vmem:[#allocation5 + $0x100] sm:$0xff]  ;;  %v393_v20 = vld [vmem:[#allocation5 + $0x110] sm:$0xff] }
  0x7a   : > { %313 = vadd.xlane.f32.xlu1 %v312_v41  ;;  %855 = vmatpush1.bf16.msra.mxu0 %v854_v42  ;;  %v876_v18 = vpack.c.bf16 %v394_v16, %v392_v15  ;;  %v396_v21 = vld [vmem:[#allocation5 + $0x128] sm:$0xff]  ;;  %v398_v22 = vld [vmem:[#allocation5 + $0x138] sm:$0xff]  ;;  %v878_v23 = vpack.c.bf16 %v393_v20, %v391_v19  ;;  %v395_v25 = vld [vmem:[#allocation5 + $0x120] sm:$0xff] }
  0x7b   : > { %293 = vadd.xlane.f32.xlu0 %v292_v43  ;;  %857 = vmatprep.subr.bf16.mxu0 %v856_v44  ;;  %v880_v24 = vpack.c.bf16 %v398_v22, %v396_v21  ;;  %v397_v26 = vld [vmem:[#allocation5 + $0x130] sm:$0xff]  ;;  %v400_v27 = vld [vmem:[#allocation5 + $0x148] sm:$0xff]  ;;  %v402_v28 = vld [vmem:[#allocation5 + $0x158] sm:$0xff] }
  0x7c   : > { %v882_v29 = vpack.c.bf16 %v397_v26, %v395_v25  ;;  %v884_v30 = vpack.c.bf16 %v402_v28, %v400_v27  ;;  %v399_v31 = vld [vmem:[#allocation5 + $0x140] sm:$0xff]  ;;  %v401_v32 = vld [vmem:[#allocation5 + $0x150] sm:$0xff]  ;;  %v404_v33 = vld [vmem:[#allocation5 + $0x168] sm:$0xff] }
  0x7d   : > { %v406_v34 = vld [vmem:[#allocation5 + $0x178] sm:$0xff]  ;;  %v886_v35 = vpack.c.bf16 %v401_v32, %v399_v31  ;;  %v403_v37 = vld [vmem:[#allocation5 + $0x160] sm:$0xff]  ;;  %v405_v38 = vld [vmem:[#allocation5 + $0x170] sm:$0xff] }
  0x7e   : > { %859 = vmatpush1.bf16.msra.mxu0 %v858_v49  ;;  %v888_v36 = vpack.c.bf16 %v406_v34, %v404_v33  ;;  %v408_v39 = vld [vmem:[#allocation5 + $0x188] sm:$0xff]  ;;  %v410_v40 = vld [vmem:[#allocation5 + $0x198] sm:$0xff]  ;;  %v890_v41 = vpack.c.bf16 %v405_v38, %v403_v37  ;;  %v407_v43 = vld [vmem:[#allocation5 + $0x180] sm:$0xff] }
  0x7f   : > { %861 = vmatprep.subr.bf16.mxu0 %v860_v50  ;;  %v892_v42 = vpack.c.bf16 %v410_v40, %v408_v39  ;;  %v409_v44 = vld [vmem:[#allocation5 + $0x190] sm:$0xff]  ;;  %v412_v45 = vld [vmem:[#allocation5 + $0x1a8] sm:$0xff]  ;;  %v414_v46 = vld [vmem:[#allocation5 + $0x1b8] sm:$0xff] }
  0x80   : > { %v894_v47 = vpack.c.bf16 %v409_v44, %v407_v43  ;;  %v896_v48 = vpack.c.bf16 %v414_v46, %v412_v45  ;;  %v411_v49 = vld [vmem:[#allocation5 + $0x1a0] sm:$0xff]  ;;  %v413_v50 = vld [vmem:[#allocation5 + $0x1b0] sm:$0xff]  ;;  %v416_v51 = vld [vmem:[#allocation5 + $0x1c8] sm:$0xff] }
  0x81   : > { %v418_v52 = vld [vmem:[#allocation5 + $0x1d8] sm:$0xff]  ;;  %v415_v53 = vld [vmem:[#allocation5 + $0x1c0] sm:$0xff]  ;;  %v898_v54 = vpack.c.bf16 %v413_v50, %v411_v49  ;;  %v533_v59 = vld [vmem:[#allocation7 + $0x8] sm:$0xff] }
  0x82   : > { %863 = vmatpush1.bf16.msra.mxu0 %v862_v55  ;;  %v417_v55 = vld [vmem:[#allocation5 + $0x1d0] sm:$0xff]  ;;  %v422_v57 = vld [vmem:[#allocation5 + $0x1f8] sm:$0xff]  ;;  %v900_v58 = vpack.c.bf16 %v418_v52, %v416_v51  ;;  %v537_v3 = vld [vmem:[#allocation7 + $0x28] sm:$0xff] }
  0x83   : > { %865 = vmatprep.subr.bf16.mxu0 %v864_v56  ;;  %v420_v56 = vld [vmem:[#allocation5 + $0x1e8] sm:$0xff]  ;;  %v535_v60 = vld [vmem:[#allocation7 + $0x18] sm:$0xff]  ;;  %v534_v63 = vld [vmem:[#allocation7 + $0x10] sm:$0xff]  ;;  %v902_v15 = vpack.c.bf16 %v417_v55, %v415_v53 }
  0x84   : > { %v539_v5 = vld [vmem:[#allocation7 + $0x38] sm:$0xff]  ;;  %v538_v11 = vld [vmem:[#allocation7 + $0x30] sm:$0xff]  ;;  %v541_v14 = vld [vmem:[#allocation7 + $0x48] sm:$0xff] }
  0x85   : > { %v543_v16 = vld [vmem:[#allocation7 + $0x58] sm:$0xff]  ;;  %v421_v19 = vld [vmem:[#allocation5 + $0x1f0] sm:$0xff]  ;;  %v540_v22 = vld [vmem:[#allocation7 + $0x40] sm:$0xff] }
  0x86   : > { %867 = vmatpush1.bf16.msra.mxu0 %v866_v61  ;;  %v532_v61 = vld [vmem:[#allocation7] sm:$0xff]  ;;  %v916_v21 = vpack.c.bf16 %v543_v16, %v541_v14  ;;  %v547_v25 = vld [vmem:[#allocation7 + $0x78] sm:$0xff]  ;;  %v549_v31 = vld [vmem:[#allocation7 + $0x88] sm:$0xff] }
  0x87   : > { %869 = vmatprep.subr.bf16.mxu0 %v868_v62  ;;  %v908_v62 = vpack.c.bf16 %v535_v60, %v533_v59  ;;  %v910_v6 = vpack.c.bf16 %v534_v63, %v532_v61  ;;  %v551_v32 = vld [vmem:[#allocation7 + $0x98] sm:$0xff]  ;;  %v553_v37 = vld [vmem:[#allocation7 + $0xa8] sm:$0xff]  ;;  %v560_v53 = vld [vmem:[#allocation7 + $0xe0] sm:$0xff] }
  0x88   : > { %v924_v34 = vpack.c.bf16 %v551_v32, %v549_v31  ;;  %v555_v38 = vld [vmem:[#allocation7 + $0xb8] sm:$0xff]  ;;  %v557_v43 = vld [vmem:[#allocation7 + $0xc8] sm:$0xff]  ;;  %v564_v59 = vld [vmem:[#allocation7 + $0x100] sm:$0xff] }
  0x89   : > { %909 = vmatprep.subr.bf16.mxu1 %v908_v62  ;;  %v928_v40 = vpack.c.bf16 %v555_v38, %v553_v37  ;;  %v559_v44 = vld [vmem:[#allocation7 + $0xd8] sm:$0xff]  ;;  %v561_v49 = vld [vmem:[#allocation7 + $0xe8] sm:$0xff]  ;;  %v566_v60 = vld [vmem:[#allocation7 + $0x110] sm:$0xff] }
  0x8a   : > { %871 = vmatpush1.bf16.msra.mxu0 %v870_v7  ;;  %v912_v7 = vpack.c.bf16 %v539_v5, %v537_v3  ;;  %911 = vmatpush1.bf16.msra.mxu1 %v910_v6  ;;  %v932_v46 = vpack.c.bf16 %v559_v44, %v557_v43  ;;  %v563_v50 = vld [vmem:[#allocation7 + $0xf8] sm:$0xff]  ;;  %v565_v55 = vld [vmem:[#allocation7 + $0x108] sm:$0xff]  ;;  %v942_v63 = vpack.c.bf16 %v566_v60, %v564_v59  ;;  %v568_v5 = vld [vmem:[#allocation7 + $0x120] sm:$0xff] }
  0x8b   : > { %873 = vmatprep.subr.bf16.mxu0 %v872_v10  ;;  %v536_v10 = vld [vmem:[#allocation7 + $0x20] sm:$0xff]  ;;  %v936_v52 = vpack.c.bf16 %v563_v50, %v561_v49  ;;  %v569_v61 = vld [vmem:[#allocation7 + $0x128] sm:$0xff]  ;;  %v571_v62 = vld [vmem:[#allocation7 + $0x138] sm:$0xff] }
  0x8c   : > { %v914_v20 = vpack.c.bf16 %v538_v11, %v536_v10  ;;  %913 = vmatprep.subr.bf16.mxu1 %v912_v7  ;;  %v944_v3 = vpack.c.bf16 %v571_v62, %v569_v61  ;;  %v570_v6 = vld [vmem:[#allocation7 + $0x130] sm:$0xff]  ;;  %v573_v7 = vld [vmem:[#allocation7 + $0x148] sm:$0xff]  ;;  %v575_v10 = vld [vmem:[#allocation7 + $0x158] sm:$0xff] }
  0x8d   : > { %v946_v11 = vpack.c.bf16 %v570_v6, %v568_v5  ;;  %v948_v14 = vpack.c.bf16 %v575_v10, %v573_v7  ;;  %v574_v16 = vld [vmem:[#allocation7 + $0x150] sm:$0xff] }
  0x8e   : > { %875 = vmatpush1.bf16.msra.mxu0 %v874_v17  ;;  %v904_v17 = vpack.c.bf16 %v422_v57, %v420_v56  ;;  %915 = vmatpush1.bf16.msra.mxu1 %v914_v20  ;;  %v567_v56 = vld [vmem:[#allocation7 + $0x118] sm:$0xff] }
  0x8f   : > { %877 = vmatprep.subr.bf16.mxu0 %v876_v18  ;;  %v419_v18 = vld [vmem:[#allocation5 + $0x1e0] sm:$0xff]  ;;  %917 = vmatprep.subr.bf16.mxu1 %v916_v21 }
  0x90   : > { %v906_v26 = vpack.c.bf16 %v421_v19, %v419_v18  ;;  %v579_v18 = vld [vmem:[#allocation7 + $0x178] sm:$0xff]  ;;  %v576_v21 = vld [vmem:[#allocation7 + $0x160] sm:$0xff] }
  0x92   : > { %879 = vmatpush1.bf16.msra.mxu0 %v878_v23  ;;  %v542_v23 = vld [vmem:[#allocation7 + $0x50] sm:$0xff] }
  0x93   : > { %881 = vmatprep.subr.bf16.mxu0 %v880_v24  ;;  %v545_v24 = vld [vmem:[#allocation7 + $0x68] sm:$0xff]  ;;  %v918_v27 = vpack.c.bf16 %v542_v23, %v540_v22  ;;  %v578_v22 = vld [vmem:[#allocation7 + $0x170] sm:$0xff] }
  0x94   : > { %v920_v28 = vpack.c.bf16 %v547_v25, %v545_v24  ;;  %v581_v23 = vld [vmem:[#allocation7 + $0x188] sm:$0xff]  ;;  %v583_v24 = vld [vmem:[#allocation7 + $0x198] sm:$0xff]  ;;  %v954_v25 = vpack.c.bf16 %v578_v22, %v576_v21 }
  0x95   : > { %919 = vmatpush1.bf16.msra.mxu1 %v918_v27  ;;  %v580_v27 = vld [vmem:[#allocation7 + $0x180] sm:$0xff] }
  0x96   : > { %883 = vmatpush1.bf16.msra.mxu0 %v882_v29  ;;  %v544_v29 = vld [vmem:[#allocation7 + $0x60] sm:$0xff]  ;;  %921 = vmatprep.subr.bf16.mxu1 %v920_v28  ;;  %v582_v28 = vld [vmem:[#allocation7 + $0x190] sm:$0xff] }
  0x97   : > { %885 = vmatprep.subr.bf16.mxu0 %v884_v30  ;;  %v546_v30 = vld [vmem:[#allocation7 + $0x70] sm:$0xff]  ;;  %v958_v31 = vpack.c.bf16 %v582_v28, %v580_v27 }
  0x98   : > { %v922_v33 = vpack.c.bf16 %v546_v30, %v544_v29  ;;  %v585_v29 = vld [vmem:[#allocation7 + $0x1a8] sm:$0xff]  ;;  %v587_v30 = vld [vmem:[#allocation7 + $0x1b8] sm:$0xff] }
  0x99   : > { %v960_v32 = vpack.c.bf16 %v587_v30, %v585_v29 }
  0x9a   : > { %887 = vmatpush1.bf16.msra.mxu0 %v886_v35  ;;  %v548_v35 = vld [vmem:[#allocation7 + $0x80] sm:$0xff]  ;;  %923 = vmatpush1.bf16.msra.mxu1 %v922_v33 }
  0x9b   : > { %889 = vmatprep.subr.bf16.mxu0 %v888_v36  ;;  %v550_v36 = vld [vmem:[#allocation7 + $0x90] sm:$0xff]  ;;  %925 = vmatprep.subr.bf16.mxu1 %v924_v34  ;;  %v584_v33 = vld [vmem:[#allocation7 + $0x1a0] sm:$0xff] }
  0x9c   : > { %v926_v39 = vpack.c.bf16 %v550_v36, %v548_v35  ;;  %v586_v34 = vld [vmem:[#allocation7 + $0x1b0] sm:$0xff]  ;;  %v589_v35 = vld [vmem:[#allocation7 + $0x1c8] sm:$0xff]  ;;  %v591_v36 = vld [vmem:[#allocation7 + $0x1d8] sm:$0xff] }
  0x9d   : > { %v962_v37 = vpack.c.bf16 %v586_v34, %v584_v33  ;;  %v964_v38 = vpack.c.bf16 %v591_v36, %v589_v35  ;;  %v588_v35 = vld [vmem:[#allocation7 + $0x1c0] sm:$0xff]  ;;  %v590_v36 = vld [vmem:[#allocation7 + $0x1d0] sm:$0xff] }
  0x9e   : > { %891 = vmatpush1.bf16.msra.mxu0 %v890_v41  ;;  %v552_v41 = vld [vmem:[#allocation7 + $0xa0] sm:$0xff]  ;;  %927 = vmatpush1.bf16.msra.mxu1 %v926_v39 }
  0x9f   : > { %893 = vmatprep.subr.bf16.mxu0 %v892_v42  ;;  %v554_v42 = vld [vmem:[#allocation7 + $0xb0] sm:$0xff]  ;;  %929 = vmatprep.subr.bf16.mxu1 %v928_v40 }
  0xa0   : > { %v930_v45 = vpack.c.bf16 %v554_v42, %v552_v41 }
  0xa2   : > { %895 = vmatpush1.bf16.msra.mxu0 %v894_v47  ;;  %v556_v47 = vld [vmem:[#allocation7 + $0xc0] sm:$0xff]  ;;  %931 = vmatpush1.bf16.msra.mxu1 %v930_v45 }
  0xa3   : > { %897 = vmatprep.subr.bf16.mxu0 %v896_v48  ;;  %v558_v48 = vld [vmem:[#allocation7 + $0xd0] sm:$0xff]  ;;  %933 = vmatprep.subr.bf16.mxu1 %v932_v46 }
  0xa4   : > { %v934_v51 = vpack.c.bf16 %v558_v48, %v556_v47 }
  0xa6   : > { %899 = vmatpush1.bf16.msra.mxu0 %v898_v54  ;;  %v562_v54 = vld [vmem:[#allocation7 + $0xf0] sm:$0xff]  ;;  %935 = vmatpush1.bf16.msra.mxu1 %v934_v51 }
  0xa7   : > { %901 = vmatprep.subr.bf16.mxu0 %v900_v58  ;;  %v938_v57 = vpack.c.bf16 %v562_v54, %v560_v53  ;;  %937 = vmatprep.subr.bf16.mxu1 %v936_v52  ;;  %v940_v58 = vpack.c.bf16 %v567_v56, %v565_v55 }
  0xaa   : > { %903 = vmatpush1.bf16.msra.mxu0 %v902_v15  ;;  %939 = vmatpush1.bf16.msra.mxu1 %v938_v57  ;;  %v572_v15 = vld [vmem:[#allocation7 + $0x140] sm:$0xff] }
  0xab   : > { %905 = vmatprep.subr.bf16.mxu0 %v904_v17  ;;  %941 = vmatprep.subr.bf16.mxu1 %v940_v58  ;;  %v577_v17 = vld [vmem:[#allocation7 + $0x168] sm:$0xff]  ;;  %v950_v19 = vpack.c.bf16 %v574_v16, %v572_v15 }
  0xac   : > { %v952_v20 = vpack.c.bf16 %v579_v18, %v577_v17 }
  0xae   : > { %907 = vmatpush1.bf16.msra.mxu0 %v906_v26  ;;  %943 = vmatpush1.bf16.msra.mxu1 %v942_v63  ;;  %v956_v26 = vpack.c.bf16 %v583_v24, %v581_v23 }
  0xaf   : > { %945 = vmatprep.subr.bf16.mxu1 %v944_v3 }
  0xb2   : > { %947 = vmatpush1.bf16.msra.mxu1 %v946_v11 }
  0xb3   : > { %949 = vmatprep.subr.bf16.mxu1 %v948_v14 }
  0xb6   : > { %951 = vmatpush1.bf16.msra.mxu1 %v950_v19 }
  0xb7   : > { %953 = vmatprep.subr.bf16.mxu1 %v952_v20 }
  0xba   : > { %955 = vmatpush1.bf16.msra.mxu1 %v954_v25 }
  0xbb   : > { %957 = vmatprep.subr.bf16.mxu1 %v956_v26 }
  0xbe   : > { %959 = vmatpush1.bf16.msra.mxu1 %v958_v31 }
  0xbf   : > { %961 = vmatprep.subr.bf16.mxu1 %v960_v32 }
  0xc2   : > { %963 = vmatpush1.bf16.msra.mxu1 %v962_v37  ;;  %v966_v37 = vpack.c.bf16 %v590_v36, %v588_v35 }
  0xc3   : > { %965 = vmatprep.subr.bf16.mxu1 %v964_v38  ;;  %v593_v38 = vld [vmem:[#allocation7 + $0x1e8] sm:$0xff] }
  0xc6   : > { %967 = vmatpush1.bf16.msra.mxu1 %v966_v37 }
  0xfb   : > { %v288_v39 = vpop.xlane.xlu1 %287 }
  0xfc   : > { %v316_v40 = vmul.f32 0.00390625, %v288_v39  ;;  %v285_v41 = vpop.xlane.xlu0 %284  ;;  %v595_v39 = vld [vmem:[#allocation7 + $0x1f8] sm:$0xff] }
  0xfd   : > { %v315_v42 = vmul.f32 0.00390625, %v285_v41  ;;  %v592_v41 = vld [vmem:[#allocation7 + $0x1e0] sm:$0xff] }
  0xfe   : > { %v324_v43 = vmul.f32 %v316_v40, %v316_v40  ;;  %v338_v19 = vsub.f32 %v1436_v1, %v316_v40  ;;  %v337_v23 = vsub.f32 %v1434_v0, %v316_v40  ;;  %v968_v40 = vpack.c.bf16 %v595_v39, %v593_v38 }
  0xff   : > { %v308_v44 = vpop.xlane.xlu1 %307  ;;  %v323_v47 = vmul.f32 %v315_v42, %v315_v42  ;;  %v335_v16 = vsub.f32 %v1438_v2, %v315_v42  ;;  %v336_v17 = vsub.f32 %v1442_v4, %v315_v42  ;;  %v594_v42 = vld [vmem:[#allocation7 + $0x1f0] sm:$0xff] }
 0x100   : > { %v320_v45 = vmul.f32 0.00390625, %v308_v44  ;;  %v305_v46 = vpop.xlane.xlu0 %304  ;;  %969 = vmatprep.subr.bf16.mxu1 %v968_v40  ;;  %v425_v44 = vlaneseq }
 0x101   : > { %v319_v48 = vmul.f32 0.00390625, %v305_v46 }
 0x102   : > { %v328_v49 = vsub.f32 %v320_v45, %v324_v43  ;;  %v970_v43 = vpack.c.bf16 %v594_v42, %v592_v41  ;;  %v426_v45 = vshrl.u32 %v425_v44, 7 }
 0x103   : > { %v327_v50 = vsub.f32 %v319_v48, %v323_v47  ;;  %v311_v51 = vpop.xlane.xlu1 %310  ;;  %v423_v47 = vld [vmem:[%s1549_s2] sm:$0x3] }
 0x104   : > { %v332_v52 = vmax.f32 %v328_v49, 0.0  ;;  %v291_v53 = vpop.xlane.xlu0 %290  ;;  %v321_v56 = vmul.f32 0.00390625, %v311_v51  ;;  %971 = vmatpush1.bf16.msra.mxu1 %v970_v43  ;;  %v427_v46 = vsub.s32 0, %v426_v45  ;;  %v431_v48 = vsub.s32 1, %v426_v45 }
 0x105   : > { %v331_v54 = vmax.f32 %v327_v50, 0.0  ;;  %v317_v55 = vmul.f32 0.00390625, %v291_v53 }
 0x106   : > { %v344_v57 = vadd.f32 1e-05, %v332_v52  ;;  %v428_v49 = vrot.slane %v423_v47, %v427_v46  ;;  %v432_v50 = vrot.slane %v423_v47, %v431_v48 }
 0x107   : > { %v343_v58 = vadd.f32 1e-05, %v331_v54  ;;  %v325_v59 = vmul.f32 %v317_v55, %v317_v55  ;;  %v314_v60 = vpop.xlane.xlu1 %313  ;;  %v340_v24 = vsub.f32 %v1452_v9, %v317_v55  ;;  %v339_v28 = vsub.f32 %v1450_v8, %v317_v55 }
 0x108   : > { %1043 = vrsqrt.f32 %v344_v57  ;;  %v294_v61 = vpop.xlane.xlu0 %293  ;;  %v322_v3 = vmul.f32 0.00390625, %v314_v60 }
 0x109   : > { %1045 = vrsqrt.f32 %v343_v58  ;;  %v329_v62 = vsub.f32 %v321_v56, %v325_v59  ;;  %v318_v63 = vmul.f32 0.00390625, %v294_v61 }
 0x10b   : > { %v333_v5 = vmax.f32 %v329_v62, 0.0  ;;  %v326_v6 = vmul.f32 %v318_v63, %v318_v63  ;;  %v342_v29 = vsub.f32 %v1460_v13, %v318_v63  ;;  %v341_v33 = vsub.f32 %v1458_v12, %v318_v63 }
 0x10d   : > { %v345_v7 = vadd.f32 1e-05, %v333_v5  ;;  %v330_v10 = vsub.f32 %v322_v3, %v326_v6 }
 0x10f   : > { %1047 = vrsqrt.f32 %v345_v7  ;;  %v334_v11 = vmax.f32 %v330_v10, 0.0 }
 0x111   : > { %v346_v14 = vadd.f32 1e-05, %v334_v11 }
 0x112   : > { %v1044_v15 = vpop.eup %1043 }
 0x113   : > { %v1046_v18 = vpop.eup %1045  ;;  %1049 = vrsqrt.f32 %v346_v14  ;;  %v354_v22 = vmul.f32 %v1044_v15, %v338_v19  ;;  %v353_v26 = vmul.f32 %v1044_v15, %v337_v23  ;;  %v596_v19 = vld [vmem:[%s1551_s4] sm:$0x3] }
 0x114   : > { %v352_v20 = vmul.f32 %v1046_v18, %v336_v17  ;;  %v351_v21 = vmul.f32 %v1046_v18, %v335_v16 }
 0x116   : > { %499 = vmatprep.mubr.f32.mxu0 %v352_v20  ;;  %v601_v20 = vrot.slane %v596_v19, %v427_v46 }
 0x117   : > { %500 = vmatmul.mubr.f32.vlgmr.msra.gmra.mrb[0].mxu0 %v351_v21  ;;  %v605_v21 = vrot.slane %v596_v19, %v431_v48 }
 0x118   : > { %505 = vmatprep.mubr.f32.mxu0 %v354_v22 }
 0x119   : > { %v1048_v25 = vpop.eup %1047 }
 0x11a   : > { %v356_v27 = vmul.f32 %v1048_v25, %v340_v24  ;;  %v355_v31 = vmul.f32 %v1048_v25, %v339_v28 }
 0x11b   : > { %506 = vmatmul.mubr.f32.gmra.mrb[2].mxu0 %v353_v26 }
 0x11c   : > { %511 = vmatprep.mubr.f32.mxu0 %v356_v27 }
 0x11d   : > { %v1050_v30 = vpop.eup %1049 }
 0x11e   : > { %v358_v32 = vmul.f32 %v1050_v30, %v342_v29  ;;  %v357_v34 = vmul.f32 %v1050_v30, %v341_v33 }
 0x11f   : > { %512 = vmatmul.mubr.f32.gmra.mrb[4].mxu0 %v355_v31 }
 0x120   : > { %517 = vmatprep.mubr.f32.mxu0 %v358_v32 }
 0x123   : > { %518 = vmatmul.mubr.f32.gmra.mrb[6].mxu0 %v357_v34 }
 0x1ea   : > { %v501_v51 = vpop.f32.mrb[0].mxu0 }
 0x1eb   : > { %v502_v52 = vadd.f32 %v501_v51, %v428_v49  ;;  %v503_v53 = vpop.f32.mrb[1].mxu0 }
 0x1ec   : > { %v504_v54 = vadd.f32 %v503_v53, %v432_v50 }
 0x1ed   : > { %v524_v57 = vmax.f32 %v502_v52, 0.0 }
 0x1ee   : > { %v507_v55 = vpop.f32.mrb[2].mxu0  ;;  %v525_v56 = vmax.f32 %v504_v54, 0.0 }
 0x1ef   : > { %v508_v58 = vadd.f32 %v507_v55, %v428_v49  ;;  %v509_v59 = vpop.f32.mrb[3].mxu0 }
 0x1f0   : > { %v510_v60 = vadd.f32 %v509_v59, %v432_v50  ;;  %672 = vmatprep.mubr.f32.mxu1 %v525_v56 }
 0x1f1   : > { %673 = vmatmul.mubr.f32.vlgmr.msra.gmra.mrb[0].mxu1 %v524_v57  ;;  %v526_v63 = vmax.f32 %v508_v58, 0.0 }
 0x1f2   : > { %v527_v61 = vmax.f32 %v510_v60, 0.0  ;;  %v513_v62 = vpop.f32.mrb[4].mxu0 }
 0x1f3   : > { %v514_v3 = vadd.f32 %v513_v62, %v428_v49  ;;  %v515_v5 = vpop.f32.mrb[5].mxu0 }
 0x1f4   : > { %v516_v6 = vadd.f32 %v515_v5, %v432_v50  ;;  %678 = vmatprep.mubr.f32.mxu1 %v527_v61 }
 0x1f5   : > { %679 = vmatmul.mubr.f32.gmra.mrb[2].mxu1 %v526_v63  ;;  %v528_v11 = vmax.f32 %v514_v3, 0.0 }
 0x1f6   : > { %v529_v7 = vmax.f32 %v516_v6, 0.0  ;;  %v519_v10 = vpop.f32.mrb[6].mxu0 }
 0x1f7   : > { %v520_v14 = vadd.f32 %v519_v10, %v428_v49  ;;  %v521_v15 = vpop.f32.mrb[7].mxu0 }
 0x1f8   : > { %v522_v16 = vadd.f32 %v521_v15, %v432_v50  ;;  %684 = vmatprep.mubr.f32.mxu1 %v529_v7 }
 0x1f9   : > { %685 = vmatmul.mubr.f32.gmra.mrb[4].mxu1 %v528_v11  ;;  %v530_v18 = vmax.f32 %v520_v14, 0.0 }
 0x1fa   : > { %v531_v17 = vmax.f32 %v522_v16, 0.0 }
 0x1fc   : > { %690 = vmatprep.mubr.f32.mxu1 %v531_v17 }
 0x1fd   : > { %691 = vmatmul.mubr.f32.gmra.mrb[6].mxu1 %v530_v18 }
 0x2c4   : > { %v674_v22 = vpop.f32.mrb[0].mxu1 }
 0x2c5   : > { %v675_v23 = vadd.f32 %v674_v22, %v601_v20  ;;  %v676_v24 = vpop.f32.mrb[1].mxu1 }
 0x2c6   : > { %v677_v25 = vadd.f32 %v676_v24, %v605_v21 }
 0x2c7   : > { %v697_v26 = vadd.f32 %v675_v23, %v1438_v2 }
 0x2c8   : > { %v698_v27 = vadd.f32 %v677_v25, %v1442_v4  ;;  %v680_v28 = vpop.f32.mrb[2].mxu1 }
 0x2c9   : > { %705 = vst [vmem:[%s272_s10] sm:$0xff] %v697_v26  ;;  %v681_v29 = vadd.f32 %v680_v28, %v601_v20  ;;  %v682_v30 = vpop.f32.mrb[3].mxu1 }
 0x2ca   : > { %706 = vst [vmem:[%s272_s10 + $0x8] sm:$0xff] %v698_v27  ;;  %v683_v31 = vadd.f32 %v682_v30, %v605_v21 }
 0x2cb   : > { %v699_v32 = vadd.f32 %v681_v29, %v1434_v0 }
 0x2cc   : > { %v700_v33 = vadd.f32 %v683_v31, %v1436_v1  ;;  %v686_v34 = vpop.f32.mrb[4].mxu1 }
 0x2cd   : > { %707 = vst [vmem:[%s272_s10 + $0x10] sm:$0xff] %v699_v32  ;;  %v687_v35 = vadd.f32 %v686_v34, %v601_v20  ;;  %v688_v36 = vpop.f32.mrb[5].mxu1 }
 0x2ce   : > { %708 = vst [vmem:[%s272_s10 + $0x18] sm:$0xff] %v700_v33  ;;  %v689_v2 = vadd.f32 %v688_v36, %v605_v21 }
 0x2cf   : > { %v701_v4 = vadd.f32 %v687_v35, %v1450_v8 }
 0x2d0   : > { %v702_v37 = vadd.f32 %v689_v2, %v1452_v9  ;;  %v692_v38 = vpop.f32.mrb[6].mxu1 }
 0x2d1   : > { %709 = vst [vmem:[%s272_s10 + $0x20] sm:$0xff] %v701_v4  ;;  %v693_v39 = vadd.f32 %v692_v38, %v601_v20  ;;  %v694_v0 = vpop.f32.mrb[7].mxu1 }
 0x2d2   : > { %710 = vst [vmem:[%s272_s10 + $0x28] sm:$0xff] %v702_v37  ;;  %v695_v1 = vadd.f32 %v694_v0, %v605_v21 }
 0x2d3   : > { %v703_v40 = vadd.f32 %v693_v39, %v1458_v12 }
 0x2d4   : > { %v704_v8 = vadd.f32 %v695_v1, %v1460_v13 }
 0x2d5   : > { %711 = vst [vmem:[%s272_s10 + $0x30] sm:$0xff] %v703_v40 }
 0x2d6   : > { %712 = vst [vmem:[%s272_s10 + $0x38] sm:$0xff] %v704_v8 }
 0x2d7   : > { %1150 = shalt.err (!%p1147_p7)
}
 0x2d8   : > { %s1151_s12 = scalar_lea.hbm %s1503_s11, 1024  ;;  %s1155_s15 = scalar_lea.hbm %s1552_s5, 4096 }
 0x2d9   : > { %p1152_p9 = scmp.ne.s32.totalorder %s1503_s11, %s1151_s12  ;;  %p1156_p5 = scmp.lt.u32.totalorder %s1503_s11, %s1552_s5 }
 0x2da   : > { %p1157_p10 = scmp.lt.u32.totalorder %s1155_s15, %s1151_s12  ;;  %p1159_p2 = scmp.lt.u32.totalorder %s1151_s12, %s1503_s11 }
 0x2db   : > { %p1153_p12 = pnand %p1152_p9, %p1365_p6 }
 0x2dc   : > { %p1158_p1 = por %p1157_p10, %p1156_p5 }
 0x2dd   : > { %p1154_p0 = pneg %p1153_p12 }
 0x2de   : > { %p1160_p4 = por %p1159_p2, %p1158_p1 }
 0x2e0   : > { %p1161_p8 = pnand %p1160_p4, %p1154_p0 }
 0x2e2   : > { %1164 = shalt.err (!%p1161_p8)
}
 0x2e3   : > { %s1215_s13 = smov 256   ;;  %s1216_s9 = smov 16  }
 0x2e4   : > { %982 = dma.vmem_to_hbm [thread:$0]  (%p1365_p6), %s1497_s28, 1024, %s1503_s11, %s714_s22, %s1215_s13, %s1215_s13, %s1216_s9  }
 0x2e5 PF: > { %p1004_p11 = scmp.ge.s32.totalorder %s1207_s21, 2  ;;  %s743_s30 = sand.u32 1, %s1195_s18  }
 0x2e6   : > { %p1567_p13 = scmp.ne.s32.totalorder %s1557_s25, 0  ;;  %s744_s17 = scalar_lea.sflag [#allocation4], %s743_s30 }
 0x2e8   : > { %p996_p3 = pnand %p1004_p11, %p1567_p13 }
 0x2ea   : > { %1190 = dma.done.wait (!%p996_p3), %s744_s17, 1024  }
 0x2eb   : > { %1192 = vsyncadd (!%p996_p3), %s744_s17, 4294966272  ;;  %p19_p7 = scmp.ge.s32.totalorder %s1355_s29, 6   ;;  %s1568_s18 = smov %s1199_s19 }
 0x2ec   : > { %s1569_s19 = smov %s1203_s20  ;;  %s1570_s20 = smov %s1371_s27 }
 0x2ed   : > { %s1571_s21 = smov %s1355_s29  ;;  %21 = sbr.rel (!%p19_p7) target bundleno = 6 (0x6), region = 93 }
 0x2f4   :  { %749 = vsyncpa [#allocation3], 1 }
 0x2f5   :  { %751 = vsyncpa [#allocation3 + $0x1], 1 }
 0x2f6   :  { %752 = vsyncpa [#allocation6], 1 }
 0x2f7   :  { %753 = vsyncpa [#allocation4], 1 }
 0x2f8   :  { %755 = vsyncpa [#allocation4 + $0x1], 1 }

</bundles_post_ra>
